<compile_context>
chip_gen: v5e
topology: v5e:2x2
jax: 0.10.0
libtpu: 0.0.40
codegen_flags: <defaults>
</compile_context>

<pallas_src>
import functools

import jax
import jax.numpy as jnp
from jax.experimental import pallas as pl
from jax.experimental.pallas import tpu as pltpu


def _round_up(n, m):
    return ((n + m - 1) // m) * m


def policy_kernel(x_ref, w1_ref, b1_ref, w2_ref, b2_ref, w3_ref, b3_ref,
                  o_ref, *, action_dim):
    # fc1 + ReLU (dropout = identity in eval mode). bf16 MXU, f32 accumulate.
    h1 = jnp.dot(x_ref[...].astype(jnp.bfloat16), w1_ref[...],
                 preferred_element_type=jnp.float32)
    h1 = jnp.maximum(h1 + b1_ref[...], 0.0)

    # fc2 + ReLU (dropout = identity in eval mode)
    h2 = jnp.dot(h1.astype(jnp.bfloat16), w2_ref[...],
                 preferred_element_type=jnp.float32)
    h2 = jnp.maximum(h2 + b2_ref[...], 0.0)

    # fc3 + ReLU (w3/b3 are lane-padded to a multiple of 128)
    logits = jnp.dot(h2.astype(jnp.bfloat16), w3_ref[...],
                     preferred_element_type=jnp.float32)
    logits = jnp.maximum(logits + b3_ref[...], 0.0)

    # Mask padded action lanes so they contribute nothing to the softmax.
    lane = jax.lax.broadcasted_iota(jnp.int32, logits.shape, 1)
    logits = jnp.where(lane < action_dim, logits, -jnp.inf)

    # Numerically stable softmax over the action axis (f32).
    m = jnp.max(logits, axis=-1, keepdims=True)
    e = jnp.exp(logits - m)
    denom = jnp.sum(e, axis=-1, keepdims=True)
    o_ref[...] = (e * pl.reciprocal(denom, approx=False)).astype(o_ref.dtype)


def policy_nn_forward(x, params, *, block_b=256):
    """Fused Pallas forward.  x: [B, state_dim] f32 -> [B, action_dim] f32."""
    w1, b1, w2, b2, w3, b3 = params
    B, S = x.shape
    A = w3.shape[1]

    # MXU operands in bf16; biases stay f32 (elementwise path stays f32).
    w1 = w1.astype(jnp.bfloat16)
    w2 = w2.astype(jnp.bfloat16)
    w3 = w3.astype(jnp.bfloat16)
    b1 = b1.astype(jnp.float32)
    b2 = b2.astype(jnp.float32)
    b3 = b3.astype(jnp.float32)

    # Lane-dense output: pad action dim to a multiple of 128.
    A_pad = _round_up(A, 128)
    if A_pad != A:
        w3 = jnp.pad(w3, ((0, 0), (0, A_pad - A)))
        b3 = jnp.pad(b3, ((0, 0), (0, A_pad - A)))

    # Batch tile (sublane-aligned). Small batches run as a single grid step;
    # large batches pipeline in blocks of `block_b` with weights resident.
    TB = min(block_b, _round_up(B, 8))
    B_pad = _round_up(B, TB)
    if B_pad != B:
        x = jnp.pad(x, ((0, B_pad - B), (0, 0)))

    grid = (B_pad // TB,)

    def const_spec(shape):
        # Same block index at every grid step -> stays VMEM-resident.
        return pl.BlockSpec(shape, lambda i: tuple(0 for _ in shape))

    out = pl.pallas_call(
        functools.partial(policy_kernel, action_dim=A),
        out_shape=jax.ShapeDtypeStruct((B_pad, A_pad), jnp.float32),
        grid_spec=pltpu.PrefetchScalarGridSpec(
            num_scalar_prefetch=0,
            grid=grid,
            in_specs=[
                pl.BlockSpec((TB, S), lambda i: (i, 0)),
                const_spec(w1.shape), const_spec(b1.shape),
                const_spec(w2.shape), const_spec(b2.shape),
                const_spec(w3.shape), const_spec(b3.shape),
            ],
            out_specs=pl.BlockSpec((TB, A_pad), lambda i: (i, 0)),
        ),
        compiler_params=pltpu.CompilerParams(
            dimension_semantics=("parallel",)),
    )(x, w1, b1, w2, b2, w3, b3)

    return out[:B, :A]


def init_params(key, state_dim, action_dim):
    """Deterministic synthetic init (PyTorch-style). Weights stored [in, out]."""
    k1, k2, k3, k4, k5, k6 = jax.random.split(key, 6)
    s1 = 1.0 / jnp.sqrt(state_dim)
    s2 = 1.0 / jnp.sqrt(512.0)
    s3 = 1.0 / jnp.sqrt(1024.0)
    w1 = jax.random.uniform(k1, (state_dim, 512), jnp.float32, -s1, s1)
    b1 = jax.random.uniform(k2, (1, 512), jnp.float32, -s1, s1)
    w2 = jax.random.uniform(k3, (512, 1024), jnp.float32, -s2, s2)
    b2 = jax.random.uniform(k4, (1, 1024), jnp.float32, -s2, s2)
    w3 = jax.random.uniform(k5, (1024, action_dim), jnp.float32, -s3, s3)
    b3 = jax.random.uniform(k6, (1, action_dim), jnp.float32, -s3, s3)
    return (w1, b1, w2, b2, w3, b3)


def reference_forward(x, params):
    """Pure-JAX reference of the PyTorch forward (eval mode), using the same
    bf16-weight / f32-accumulate precision as the kernel."""
    w1, b1, w2, b2, w3, b3 = params

    def lin(v, w, b):
        return jnp.dot(v.astype(jnp.bfloat16), w.astype(jnp.bfloat16),
                       preferred_element_type=jnp.float32) + b

    y = jnp.maximum(lin(x, w1, b1), 0.0)
    y = jnp.maximum(lin(y, w2, b2), 0.0)
    y = jnp.maximum(lin(y, w3, b3), 0.0)
    return jax.nn.softmax(y, axis=1)


if __name__ == "__main__":
    key = jax.random.PRNGKey(0)
    k_x, k_x2, k_p = jax.random.split(key, 3)

    state_dim = 32
    action_dim = 16
    params = init_params(k_p, state_dim, action_dim)

    # Small single-tile case (B=4, padded to one 8-row block).
    x = jax.random.normal(k_x, (4, state_dim), jnp.float32)
    out = jax.block_until_ready(policy_nn_forward(x, params))
    ref = reference_forward(x, params)
    assert out.shape == (4, action_dim)
    assert jnp.allclose(jnp.sum(out, axis=1), 1.0, atol=1e-5)
    assert jnp.allclose(out, ref, atol=1e-4, rtol=1e-4)

    # Multi-step batch grid (B=40, TB=16 -> 3 grid steps, weights resident).
    x2 = jax.random.normal(k_x2, (40, state_dim), jnp.float32)
    out2 = jax.block_until_ready(policy_nn_forward(x2, params, block_b=16))
    ref2 = reference_forward(x2, params)
    assert out2.shape == (40, action_dim)
    assert jnp.allclose(jnp.sum(out2, axis=1), 1.0, atol=1e-5)
    assert jnp.allclose(out2, ref2, atol=1e-4, rtol=1e-4)

    print("KERNEL_OK")
</pallas_src>

<mosaic_0001>
module attributes {stable_mosaic.version = 11 : i64} {
  func.func @policy_kernel(%arg0: i32, %arg1: memref<8x32xf32, #tpu.memory_space<vmem>>, %arg2: memref<32x512xbf16, #tpu.memory_space<vmem>>, %arg3: memref<1x512xf32, #tpu.memory_space<vmem>>, %arg4: memref<512x1024xbf16, #tpu.memory_space<vmem>>, %arg5: memref<1x1024xf32, #tpu.memory_space<vmem>>, %arg6: memref<1024x128xbf16, #tpu.memory_space<vmem>>, %arg7: memref<1x128xf32, #tpu.memory_space<vmem>>, %arg8: memref<8x128xf32, #tpu.memory_space<vmem>>) attributes {dimension_semantics = [#tpu.dimension_semantics<parallel>], iteration_bounds = array<i64: 1>, scalar_prefetch = 0 : i64, scratch_operands = 0 : i64, tpu.core_type = #tpu.core_type<tc>, window_params = [{transform_indices = @transform_0, window_bounds = array<i64: 8, 32>}, {pipeline_mode = #tpu.pipeline_mode<synchronous>, transform_indices = @transform_1, window_bounds = array<i64: 32, 512>}, {pipeline_mode = #tpu.pipeline_mode<synchronous>, transform_indices = @transform_2, window_bounds = array<i64: 1, 512>}, {pipeline_mode = #tpu.pipeline_mode<synchronous>, transform_indices = @transform_3, window_bounds = array<i64: 512, 1024>}, {pipeline_mode = #tpu.pipeline_mode<synchronous>, transform_indices = @transform_4, window_bounds = array<i64: 1, 1024>}, {pipeline_mode = #tpu.pipeline_mode<synchronous>, transform_indices = @transform_5, window_bounds = array<i64: 1024, 128>}, {pipeline_mode = #tpu.pipeline_mode<synchronous>, transform_indices = @transform_6, window_bounds = array<i64: 1, 128>}, {transform_indices = @transform_7, window_bounds = array<i64: 8, 128>}]} {
    %c0 = arith.constant 0 : index
    %c0_0 = arith.constant 0 : index
    %0 = vector.load %arg1[%c0, %c0_0] : memref<8x32xf32, #tpu.memory_space<vmem>>, vector<8x32xf32>
    %1 = arith.truncf %0 : vector<8x32xf32> to vector<8x32xbf16>
    %c0_1 = arith.constant 0 : index
    %c0_2 = arith.constant 0 : index
    %2 = vector.load %arg2[%c0_1, %c0_2] : memref<32x512xbf16, #tpu.memory_space<vmem>>, vector<32x512xbf16>
    %cst = arith.constant dense<0.000000e+00> : vector<8x512xf32>
    %3 = tpu.matmul %1, %2, %cst {dimension_numbers = #tpu.dot_dimension_numbers<[1], [0], [0], [1], [0, 0, 1, 1], [], []>} : vector<8x32xbf16>, vector<32x512xbf16>, vector<8x512xf32> -> vector<8x512xf32>
    %c0_3 = arith.constant 0 : index
    %c0_4 = arith.constant 0 : index
    %4 = vector.load %arg3[%c0_3, %c0_4] : memref<1x512xf32, #tpu.memory_space<vmem>>, vector<1x512xf32>
    %5 = vector.broadcast %4 : vector<1x512xf32> to vector<8x512xf32>
    %6 = arith.addf %3, %5 : vector<8x512xf32>
    %cst_5 = arith.constant 0.000000e+00 : f32
    %7 = vector.broadcast %cst_5 : f32 to vector<8x512xf32>
    %8 = arith.maximumf %6, %7 : vector<8x512xf32>
    %9 = arith.truncf %8 : vector<8x512xf32> to vector<8x512xbf16>
    %c0_6 = arith.constant 0 : index
    %c0_7 = arith.constant 0 : index
    %10 = vector.load %arg4[%c0_6, %c0_7] : memref<512x1024xbf16, #tpu.memory_space<vmem>>, vector<512x1024xbf16>
    %cst_8 = arith.constant dense<0.000000e+00> : vector<8x1024xf32>
    %11 = tpu.matmul %9, %10, %cst_8 {dimension_numbers = #tpu.dot_dimension_numbers<[1], [0], [0], [1], [0, 0, 1, 1], [], []>} : vector<8x512xbf16>, vector<512x1024xbf16>, vector<8x1024xf32> -> vector<8x1024xf32>
    %c0_9 = arith.constant 0 : index
    %c0_10 = arith.constant 0 : index
    %12 = vector.load %arg5[%c0_9, %c0_10] : memref<1x1024xf32, #tpu.memory_space<vmem>>, vector<1x1024xf32>
    %13 = vector.broadcast %12 : vector<1x1024xf32> to vector<8x1024xf32>
    %14 = arith.addf %11, %13 : vector<8x1024xf32>
    %cst_11 = arith.constant 0.000000e+00 : f32
    %15 = vector.broadcast %cst_11 : f32 to vector<8x1024xf32>
    %16 = arith.maximumf %14, %15 : vector<8x1024xf32>
    %17 = arith.truncf %16 : vector<8x1024xf32> to vector<8x1024xbf16>
    %c0_12 = arith.constant 0 : index
    %c0_13 = arith.constant 0 : index
    %18 = vector.load %arg6[%c0_12, %c0_13] : memref<1024x128xbf16, #tpu.memory_space<vmem>>, vector<1024x128xbf16>
    %cst_14 = arith.constant dense<0.000000e+00> : vector<8x128xf32>
    %19 = tpu.matmul %17, %18, %cst_14 {dimension_numbers = #tpu.dot_dimension_numbers<[1], [0], [0], [1], [0, 0, 1, 1], [], []>} : vector<8x1024xbf16>, vector<1024x128xbf16>, vector<8x128xf32> -> vector<8x128xf32>
    %c0_15 = arith.constant 0 : index
    %c0_16 = arith.constant 0 : index
    %20 = vector.load %arg7[%c0_15, %c0_16] : memref<1x128xf32, #tpu.memory_space<vmem>>, vector<1x128xf32>
    %21 = vector.broadcast %20 : vector<1x128xf32> to vector<8x128xf32>
    %22 = arith.addf %19, %21 : vector<8x128xf32>
    %cst_17 = arith.constant 0.000000e+00 : f32
    %23 = vector.broadcast %cst_17 : f32 to vector<8x128xf32>
    %24 = arith.maximumf %22, %23 : vector<8x128xf32>
    %25 = tpu.iota {dimensions = array<i32: 1>} : vector<8x128xi32>
    %c16_i32 = arith.constant 16 : i32
    %26 = vector.broadcast %c16_i32 : i32 to vector<8x128xi32>
    %27 = arith.cmpi slt, %25, %26 : vector<8x128xi32>
    %cst_18 = arith.constant 0xFF800000 : f32
    %28 = vector.broadcast %cst_18 : f32 to vector<8x128xf32>
    %29 = arith.select %27, %24, %28 : vector<8x128xi1>, vector<8x128xf32>
    %cst_19 = arith.constant dense<0xFF800000> : vector<8xf32>
    %30 = vector.multi_reduction <maximumf>, %29, %cst_19 [1] : vector<8x128xf32> to vector<8xf32>
    %31 = vector.shape_cast %30 : vector<8xf32> to vector<8x1xf32>
    %32 = vector.broadcast %31 : vector<8x1xf32> to vector<8x128xf32>
    %33 = arith.subf %29, %32 : vector<8x128xf32>
    %34 = math.exp %33 : vector<8x128xf32>
    %cst_20 = arith.constant dense<0.000000e+00> : vector<8xf32>
    %35 = vector.multi_reduction <add>, %34, %cst_20 [1] : vector<8x128xf32> to vector<8xf32>
    %36 = vector.shape_cast %35 : vector<8xf32> to vector<8x1xf32>
    %37 = tpu.reciprocal %36 : vector<8x1xf32> -> vector<8x1xf32>
    %38 = vector.broadcast %37 : vector<8x1xf32> to vector<8x128xf32>
    %39 = arith.mulf %34, %38 : vector<8x128xf32>
    %c0_21 = arith.constant 0 : index
    %c0_22 = arith.constant 0 : index
    %40 = vector.load %arg8[%c0_21, %c0_22] : memref<8x128xf32, #tpu.memory_space<vmem>>, vector<8x128xf32>
    tpu.vector_store %arg8[%c0_21, %c0_22], %39 {strides = array<i32>} : memref<8x128xf32, #tpu.memory_space<vmem>>, vector<8x128xf32>,
    return
  }
  func.func @transform_0(%arg0: i32) -> (i32, i32) {
    %c0_i32 = arith.constant 0 : i32
    %c0_i32_0 = arith.constant 0 : i32
    return %arg0, %c0_i32 : i32, i32
  }
  func.func @transform_1(%arg0: i32) -> (i32, i32) {
    %c0_i32 = arith.constant 0 : i32
    %c0_i32_0 = arith.constant 0 : i32
    %c0_i32_1 = arith.constant 0 : i32
    return %c0_i32, %c0_i32_0 : i32, i32
  }
  func.func @transform_2(%arg0: i32) -> (i32, i32) {
    %c0_i32 = arith.constant 0 : i32
    %c0_i32_0 = arith.constant 0 : i32
    %c0_i32_1 = arith.constant 0 : i32
    return %c0_i32, %c0_i32_0 : i32, i32
  }
  func.func @transform_3(%arg0: i32) -> (i32, i32) {
    %c0_i32 = arith.constant 0 : i32
    %c0_i32_0 = arith.constant 0 : i32
    %c0_i32_1 = arith.constant 0 : i32
    return %c0_i32, %c0_i32_0 : i32, i32
  }
  func.func @transform_4(%arg0: i32) -> (i32, i32) {
    %c0_i32 = arith.constant 0 : i32
    %c0_i32_0 = arith.constant 0 : i32
    %c0_i32_1 = arith.constant 0 : i32
    return %c0_i32, %c0_i32_0 : i32, i32
  }
  func.func @transform_5(%arg0: i32) -> (i32, i32) {
    %c0_i32 = arith.constant 0 : i32
    %c0_i32_0 = arith.constant 0 : i32
    %c0_i32_1 = arith.constant 0 : i32
    return %c0_i32, %c0_i32_0 : i32, i32
  }
  func.func @transform_6(%arg0: i32) -> (i32, i32) {
    %c0_i32 = arith.constant 0 : i32
    %c0_i32_0 = arith.constant 0 : i32
    %c0_i32_1 = arith.constant 0 : i32
    return %c0_i32, %c0_i32_0 : i32, i32
  }
  func.func @transform_7(%arg0: i32) -> (i32, i32) {
    %c0_i32 = arith.constant 0 : i32
    %c0_i32_0 = arith.constant 0 : i32
    return %arg0, %c0_i32 : i32, i32
  }
}

</mosaic_0001>

<bundles_post_ra>
// kernel: tpu_custom_call.1
= control target key start
LH: loop header
LB: loop body
LE: loop exit
PB: predicated region body
PF: predicated region fallthrough
CT: control target
= control target key end

     0   :  { %12 = vsyncpa [#allocation3], 0  ;;  %s4898_s0 = inlined_call_operand.hbm [shape: f32[8,32], index: 0, kind: input, shape index: {}]   ;;  %s4899_s1 = inlined_call_operand.hbm [shape: bf16[32,512], index: 1, kind: input, shape index: {}]   ;;  %s4900_s2 = inlined_call_operand.hbm [shape: f32[1,512], index: 2, kind: input, shape index: {}]   ;;  %s4901_s3 = inlined_call_operand.hbm [shape: bf16[512,1024], index: 3, kind: input, shape index: {}]   ;;  %s4902_s4 = inlined_call_operand.hbm [shape: f32[1,1024], index: 4, kind: input, shape index: {}]   ;;  %s4903_s5 = inlined_call_operand.hbm [shape: bf16[1024,128], index: 5, kind: input, shape index: {}]   ;;  %s4904_s6 = inlined_call_operand.vmem [shape: f32[1,128], index: 6, kind: input, shape index: {}]   ;;  %s4905_s7 = inlined_call_operand.hbm [shape: f32[8,128], index: 7, kind: output, shape index: {}]  }
   0x1   :  { %13 = vsyncpa [#allocation6], 0 }
   0x2   :  { %14 = vsyncpa [#allocation9], 0 }
   0x3   :  { %15 = vsyncpa [#allocation12], 0  ;;  %s32_s26 = sshll.u32 %s4899_s1, 4  ;;  %s33_s26 = int_to_ptr.hbm [resolvable:$true] %s32_s26 }
   0x4   :  { %16 = vsyncpa [#allocation4], 0  ;;  %s4734_s27 = smov [#allocation5]   ;;  %s56_s8 = sshll.u32 %s4901_s3, 4  ;;  %s57_s8 = int_to_ptr.hbm [resolvable:$true] %s56_s8 }
   0x5   :  { %s34_s28 = sshll.u32 %s4734_s27, 4  ;;  %s4735_s9 = smov 256   ;;  %s35_s28 = int_to_ptr.vmem [resolvable:$true] %s34_s28 }
   0x6   :  { %s4736_s10 = smov 16   ;;  %s4737_s11 = smov [#allocation8]  }
   0x7   :  { %40 = dma.hbm_to_vmem [thread:$0]  %s33_s26, 1024, %s35_s28, [#allocation6], %s4735_s9, %s4735_s9, %s4736_s10  }
   0x8   :  { %s58_s12 = sshll.u32 %s4737_s11, 4  ;;  %s4738_s13 = smov 512   ;;  %s59_s12 = int_to_ptr.vmem [resolvable:$true] %s58_s12 }
   0x9   :  { %s4739_s14 = smov 32   ;;  %s22_s16 = sshll.u32 %s4898_s0, 4  ;;  %s23_s16 = int_to_ptr.hbm [resolvable:$true] %s22_s16 }
   0xa   :  { %64 = dma.hbm_to_vmem [thread:$0]  %s57_s8, 32768, %s59_s12, [#allocation9], %s4738_s13, %s4738_s13, %s4739_s14  }
   0xb   :  { %s4740_s17 = smov [#allocation2]   ;;  %s46_s20 = sshll.u32 %s4900_s2, 4  ;;  %s47_s20 = int_to_ptr.hbm [resolvable:$true] %s46_s20 }
   0xc   :  { %s24_s18 = sshll.u32 %s4740_s17, 4  ;;  %s4741_s21 = smov [#allocation7]   ;;  %s25_s18 = int_to_ptr.vmem [resolvable:$true] %s24_s18 }
   0xd   :  { %27 = dma.hbm_to_vmem [thread:$0]  %s23_s16, 128, %s25_s18, [#allocation3]  }
   0xe   :  { %s48_s22 = sshll.u32 %s4741_s21, 4  ;;  %s70_s25 = sshll.u32 %s4902_s4, 4  ;;  %s49_s22 = int_to_ptr.vmem [resolvable:$true] %s48_s22  ;;  %s71_s25 = int_to_ptr.hbm [resolvable:$true] %s70_s25 }
   0xf   :  { %51 = dma.hbm_to_vmem [thread:$0]  %s47_s20, 64, %s49_s22, [#allocation6]  }
  0x10   :  { %s80_s27 = sshll.u32 %s4903_s5, 4  ;;  %s4742_s28 = smov [#allocation10]   ;;  %s81_s27 = int_to_ptr.hbm [resolvable:$true] %s80_s27 }
  0x11   :  { %s72_s29 = sshll.u32 %s4742_s28, 4  ;;  %s4743_s2 = smov [#allocation11]   ;;  %s73_s29 = int_to_ptr.vmem [resolvable:$true] %s72_s29 }
  0x12   :  { %75 = dma.hbm_to_vmem [thread:$0]  %s71_s25, 128, %s73_s29, [#allocation9]  }
  0x13   :  { %s82_s30 = sshll.u32 %s4743_s2, 4  ;;  %s4744_s8 = smov 64   ;;  %s83_s30 = int_to_ptr.vmem [resolvable:$true] %s82_s30 }
  0x14   :  { %s4745_s9 = smov 4  }
  0x15   :  { %88 = dma.hbm_to_vmem [thread:$0]  %s81_s27, 8192, %s83_s30, [#allocation12], %s4744_s8, %s4744_s8, %s4745_s9  }
  0x16   :  { %4724 = dma.done.wait [#allocation3], 128  }
  0x17   :  { %4725 = vsyncadd [#allocation3], 4294967168 }
  0x18   :  { %4726 = dma.done.wait [#allocation6], 1088  }
  0x19   :  { %4727 = vsyncadd [#allocation6], 4294966208 }
  0x1a   :  { %4728 = dma.done.wait [#allocation9], 32896  }
  0x1b   :  { %4729 = vsyncadd [#allocation9], 4294934400 }
  0x1c   :  { %4730 = dma.done.wait [#allocation12], 8192  }
  0x1d   :  { %4731 = vsyncadd [#allocation12], 4294959104  ;;  %v2912_v0 = vld [vmem:[#allocation5 + $0x20] sm:$0xf]  ;;  %v4216_v1 = vld [vmem:[#allocation5 + $0x2c] sm:$0xf0] }
  0x1e   :  { %v4214_v2 = vld [vmem:[#allocation5 + $0x24] sm:$0xf]  ;;  %v2913_v3 = vor.u32 %v4216_v1, %v2912_v0  ;;  %v2914_v4 = vld [vmem:[#allocation5 + $0x30] sm:$0xf0]  ;;  %v2920_v5 = vld [vmem:[#allocation5 + $0x28] sm:$0xf] }
  0x1f   :  { %v4217_v6 = vld [vmem:[#allocation5 + $0x34] sm:$0xf0]  ;;  %v2917_v7 = vor.u32 %v4214_v2, %v2914_v4  ;;  %v4215_v9 = vld [vmem:[#allocation5 + $0x2c] sm:$0xf]  ;;  %v2922_v10 = vld [vmem:[#allocation5 + $0x38] sm:$0xf0] }
  0x20   :  { %v2921_v8 = vor.u32 %v4217_v6, %v2920_v5  ;;  %v2896_v11 = vld [vmem:[#allocation5] sm:$0xf]  ;;  %186 = vmatpush.bf16.msra.mxu0 %v2913_v3  ;;  %v2925_v12 = vor.u32 %v4215_v9, %v2922_v10  ;;  %v4212_v13 = vld [vmem:[#allocation5 + $0xc] sm:$0xf0]  ;;  %v4210_v14 = vld [vmem:[#allocation5 + $0x4] sm:$0xf] }
  0x21   :  { %v2898_v15 = vld [vmem:[#allocation5 + $0x10] sm:$0xf0]  ;;  %199 = vmatpush.bf16.msra.mxu1 %v2917_v7  ;;  %v2897_v16 = vor.u32 %v4212_v13, %v2896_v11  ;;  %v2904_v18 = vld [vmem:[#allocation5 + $0x8] sm:$0xf]  ;;  %v4213_v19 = vld [vmem:[#allocation5 + $0x14] sm:$0xf0] }
  0x22   :  { %212 = vmatpush.bf16.msra.mxu2 %v2921_v8  ;;  %v2901_v17 = vor.u32 %v4210_v14, %v2898_v15  ;;  %v4211_v20 = vld [vmem:[#allocation5 + $0xc] sm:$0xf]  ;;  %225 = vmatpush.bf16.msra.mxu3 %v2925_v12  ;;  %v2905_v21 = vor.u32 %v4213_v19, %v2904_v18  ;;  %v2906_v22 = vld [vmem:[#allocation5 + $0x18] sm:$0xf0]  ;;  %vm176_vm0 = vcmask 261120   ;;  %s2881_s13 = sshll.u32 %s4905_s7, 4  ;;  %s2882_s13 = int_to_ptr.hbm [resolvable:$true] %s2881_s13 }
  0x23   :  { %v116_v23 = vld [vmem:[#allocation2] sm:$0xff]  ;;  %v3156_v24 = vld [vmem:[#allocation8 + $0x1c0] sm:$0xf]  ;;  %v2909_v25 = vor.u32 %v4211_v20, %v2906_v22 }
  0x24   :  { %v117_v26 = vpack.c.bf16 %v116_v23, %v116_v23  ;;  %v4278_v27 = vld [vmem:[#allocation8 + $0x1dc] sm:$0xf0]  ;;  %187 = vmatpush.bf16.msra.mxu0 %v2897_v16 }
  0x25   :  { %v3412_v28 = vld [vmem:[#allocation8 + $0x3c0] sm:$0xf]  ;;  %v3157_v30 = vor.u32 %v4278_v27, %v3156_v24  ;;  %200 = vmatpush.bf16.msra.mxu1 %v2901_v17 }
  0x26   :  { %v4342_v29 = vld [vmem:[#allocation8 + $0x3dc] sm:$0xf0]  ;;  %213 = vmatpush.bf16.msra.mxu2 %v2905_v21  ;;  %226 = vmatpush.bf16.msra.mxu3 %v2909_v25 }
  0x27   :  { %v3413_v31 = vor.u32 %v4342_v29, %v3412_v28  ;;  %v3124_v32 = vld [vmem:[#allocation8 + $0x180] sm:$0xf]  ;;  %2926 = vmatmul.msk.bf16.vlgmr.msra.gmra.mxu0 %vm176_vm0, %v117_v26 }
  0x28   :  { %v4270_v33 = vld [vmem:[#allocation8 + $0x19c] sm:$0xf0]  ;;  %1794 = vmatpush.bf16.msrb.mxu0 %v3157_v30  ;;  %2927 = vmatmul.msk.bf16.vlgmr.msra.gmra.mxu1 %vm176_vm0, %v117_v26 }
  0x29   :  { %v3380_v34 = vld [vmem:[#allocation8 + $0x380] sm:$0xf]  ;;  %v3125_v38 = vor.u32 %v4270_v33, %v3124_v32  ;;  %1807 = vmatpush.bf16.msrb.mxu1 %v3413_v31  ;;  %2928 = vmatmul.msk.bf16.vlgmr.msra.gmra.mxu2 %vm176_vm0, %v117_v26 }
  0x2a   :  { %v4334_v35 = vld [vmem:[#allocation8 + $0x39c] sm:$0xf0]  ;;  %2929 = vmatmul.msk.bf16.vlgmr.msra.gmra.mxu3 %vm176_vm0, %v117_v26 }
  0x2b   :  { %v3668_v36 = vld [vmem:[#allocation8 + $0x5c0] sm:$0xf]  ;;  %v3381_v43 = vor.u32 %v4334_v35, %v3380_v34 }
  0x2c   :  { %v4406_v37 = vld [vmem:[#allocation8 + $0x5dc] sm:$0xf0]  ;;  %1795 = vmatpush.bf16.msrb.mxu0 %v3125_v38 }
  0x2d   :  { %v3669_v39 = vor.u32 %v4406_v37, %v3668_v36  ;;  %v3924_v40 = vld [vmem:[#allocation8 + $0x7c0] sm:$0xf]  ;;  %1808 = vmatpush.bf16.msrb.mxu1 %v3381_v43 }
  0x2e   :  { %v4470_v41 = vld [vmem:[#allocation8 + $0x7dc] sm:$0xf0] }
  0x2f   :  { %v3092_v42 = vld [vmem:[#allocation8 + $0x140] sm:$0xf]  ;;  %v3925_v44 = vor.u32 %v4470_v41, %v3924_v40  ;;  %1820 = vmatpush.bf16.msrb.mxu2 %v3669_v39 }
  0x30   :  { %v4262_v45 = vld [vmem:[#allocation8 + $0x15c] sm:$0xf0] }
  0x31   :  { %v3348_v46 = vld [vmem:[#allocation8 + $0x340] sm:$0xf]  ;;  %1833 = vmatpush.bf16.msrb.mxu3 %v3925_v44  ;;  %v3093_v53 = vor.u32 %v4262_v45, %v3092_v42 }
  0x32   :  { %v4326_v47 = vld [vmem:[#allocation8 + $0x35c] sm:$0xf0] }
  0x33   :  { %v3636_v48 = vld [vmem:[#allocation8 + $0x580] sm:$0xf]  ;;  %v3349_v58 = vor.u32 %v4326_v47, %v3348_v46  ;;  %1796 = vmatpush.bf16.msrb.mxu0 %v3093_v53 }
  0x34   :  { %v4398_v49 = vld [vmem:[#allocation8 + $0x59c] sm:$0xf0] }
  0x35   :  { %v3892_v50 = vld [vmem:[#allocation8 + $0x780] sm:$0xf]  ;;  %v3637_v51 = vor.u32 %v4398_v49, %v3636_v48  ;;  %1809 = vmatpush.bf16.msrb.mxu1 %v3349_v58  ;;  %v4274_v48 = vld [vmem:[#allocation8 + $0x1c4] sm:$0xf] }
  0x36   :  { %v4462_v52 = vld [vmem:[#allocation8 + $0x79c] sm:$0xf0]  ;;  %v3158_v49 = vld [vmem:[#allocation8 + $0x1e0] sm:$0xf0] }
  0x37   :  { %v3893_v54 = vor.u32 %v4462_v52, %v3892_v50  ;;  %v3060_v55 = vld [vmem:[#allocation8 + $0x100] sm:$0xf]  ;;  %1821 = vmatpush.bf16.msrb.mxu2 %v3637_v51  ;;  %v4338_v50 = vld [vmem:[#allocation8 + $0x3c4] sm:$0xf] }
  0x38   :  { %v4254_v56 = vld [vmem:[#allocation8 + $0x11c] sm:$0xf0]  ;;  %v3414_v51 = vld [vmem:[#allocation8 + $0x3e0] sm:$0xf0] }
  0x39   :  { %v3604_v57 = vld [vmem:[#allocation8 + $0x540] sm:$0xf]  ;;  %1834 = vmatpush.bf16.msrb.mxu3 %v3893_v54  ;;  %v3061_v1 = vor.u32 %v4254_v56, %v3060_v55  ;;  %v4266_v55 = vld [vmem:[#allocation8 + $0x184] sm:$0xf] }
  0x3a   :  { %v4390_v59 = vld [vmem:[#allocation8 + $0x55c] sm:$0xf0] }
  0x3b   :  { %v3860_v60 = vld [vmem:[#allocation8 + $0x740] sm:$0xf]  ;;  %v3605_v0 = vor.u32 %v4390_v59, %v3604_v57  ;;  %1797 = vmatpush.bf16.msrb.mxu0 %v3061_v1  ;;  %v3126_v1 = vld [vmem:[#allocation8 + $0x1a0] sm:$0xf0] }
  0x3c   :  { %v4454_v61 = vld [vmem:[#allocation8 + $0x75c] sm:$0xf0] }
  0x3d   :  { %v3316_v62 = vld [vmem:[#allocation8 + $0x300] sm:$0xf]  ;;  %v3861_v2 = vor.u32 %v4454_v61, %v3860_v60  ;;  %1822 = vmatpush.bf16.msrb.mxu2 %v3605_v0  ;;  %v3161_v60 = vor.u32 %v4274_v48, %v3158_v49  ;;  %v3417_v0 = vor.u32 %v4338_v50, %v3414_v51  ;;  %v4234_v48 = vld [vmem:[#allocation8 + $0x84] sm:$0xf] }
  0x3e   :  { %v4318_v63 = vld [vmem:[#allocation8 + $0x31c] sm:$0xf0]  ;;  %v2998_v49 = vld [vmem:[#allocation8 + $0xa0] sm:$0xf0] }
  0x3f   :  { %v3028_v3 = vld [vmem:[#allocation8 + $0xc0] sm:$0xf]  ;;  %v3317_v6 = vor.u32 %v4318_v63, %v3316_v62  ;;  %1835 = vmatpush.bf16.msrb.mxu3 %v3861_v2  ;;  %v4402_v62 = vld [vmem:[#allocation8 + $0x5c4] sm:$0xf] }
  0x40   :  { %v3572_v4 = vld [vmem:[#allocation8 + $0x500] sm:$0xf]  ;;  %v3670_v63 = vld [vmem:[#allocation8 + $0x5e0] sm:$0xf0] }
  0x41   :  { %v4382_v5 = vld [vmem:[#allocation8 + $0x51c] sm:$0xf0]  ;;  %1810 = vmatpush.bf16.msrb.mxu1 %v3317_v6  ;;  %v4466_v2 = vld [vmem:[#allocation8 + $0x7c4] sm:$0xf] }
  0x42   :  { %v4246_v7 = vld [vmem:[#allocation8 + $0xdc] sm:$0xf0]  ;;  %v3573_v12 = vor.u32 %v4382_v5, %v3572_v4  ;;  %v4330_v4 = vld [vmem:[#allocation8 + $0x384] sm:$0xf] }
  0x43   :  { %v3828_v8 = vld [vmem:[#allocation8 + $0x700] sm:$0xf]  ;;  %v3029_v13 = vor.u32 %v4246_v7, %v3028_v3  ;;  %v3926_v3 = vld [vmem:[#allocation8 + $0x7e0] sm:$0xf0] }
  0x44   :  { %v4446_v9 = vld [vmem:[#allocation8 + $0x71c] sm:$0xf0]  ;;  %1823 = vmatpush.bf16.msrb.mxu2 %v3573_v12  ;;  %v3382_v5 = vld [vmem:[#allocation8 + $0x3a0] sm:$0xf0] }
  0x45   :  { %v3284_v10 = vld [vmem:[#allocation8 + $0x2c0] sm:$0xf]  ;;  %v3829_v14 = vor.u32 %v4446_v9, %v3828_v8  ;;  %1798 = vmatpush.bf16.msrb.mxu0 %v3029_v13  ;;  %v3673_v8 = vor.u32 %v4402_v62, %v3670_v63  ;;  %v3129_v9 = vor.u32 %v4266_v55, %v3126_v1  ;;  %v4394_v12 = vld [vmem:[#allocation8 + $0x584] sm:$0xf] }
  0x46   :  { %v4310_v11 = vld [vmem:[#allocation8 + $0x2dc] sm:$0xf0]  ;;  %v3638_v13 = vld [vmem:[#allocation8 + $0x5a0] sm:$0xf0] }
  0x47   :  { %v2996_v15 = vld [vmem:[#allocation8 + $0x80] sm:$0xf]  ;;  %v3285_v18 = vor.u32 %v4310_v11, %v3284_v10  ;;  %1836 = vmatpush.bf16.msrb.mxu3 %v3829_v14  ;;  %v3929_v10 = vor.u32 %v4466_v2, %v3926_v3  ;;  %v4258_v11 = vld [vmem:[#allocation8 + $0x144] sm:$0xf]  ;;  %v3385_v14 = vor.u32 %v4330_v4, %v3382_v5 }
  0x48   :  { %v3540_v16 = vld [vmem:[#allocation8 + $0x4c0] sm:$0xf]  ;;  %v4298_v50 = vld [vmem:[#allocation8 + $0x284] sm:$0xf] }
  0x49   :  { %v4374_v17 = vld [vmem:[#allocation8 + $0x4dc] sm:$0xf0]  ;;  %1811 = vmatpush.bf16.msrb.mxu1 %v3285_v18  ;;  %v4322_v18 = vld [vmem:[#allocation8 + $0x344] sm:$0xf] }
  0x4a   :  { %v4238_v19 = vld [vmem:[#allocation8 + $0x9c] sm:$0xf0]  ;;  %v3541_v24 = vor.u32 %v4374_v17, %v3540_v16  ;;  %v4458_v16 = vld [vmem:[#allocation8 + $0x784] sm:$0xf] }
  0x4b   :  { %v3796_v20 = vld [vmem:[#allocation8 + $0x6c0] sm:$0xf]  ;;  %v2997_v25 = vor.u32 %v4238_v19, %v2996_v15  ;;  %v3094_v15 = vld [vmem:[#allocation8 + $0x160] sm:$0xf0] }
  0x4c   :  { %v4438_v21 = vld [vmem:[#allocation8 + $0x6dc] sm:$0xf0]  ;;  %1824 = vmatpush.bf16.msrb.mxu2 %v3541_v24  ;;  %v3894_v17 = vld [vmem:[#allocation8 + $0x7a0] sm:$0xf0] }
  0x4d   :  { %v3252_v22 = vld [vmem:[#allocation8 + $0x280] sm:$0xf]  ;;  %v3797_v26 = vor.u32 %v4438_v21, %v3796_v20  ;;  %1799 = vmatpush.bf16.msrb.mxu0 %v2997_v25  ;;  %v3350_v19 = vld [vmem:[#allocation8 + $0x360] sm:$0xf0]  ;;  %v3641_v20 = vor.u32 %v4394_v12, %v3638_v13  ;;  %v3097_v21 = vor.u32 %v4258_v11, %v3094_v15 }
  0x4e   :  { %v4302_v23 = vld [vmem:[#allocation8 + $0x29c] sm:$0xf0]  ;;  %v4386_v24 = vld [vmem:[#allocation8 + $0x544] sm:$0xf] }
  0x4f   :  { %v2964_v27 = vld [vmem:[#allocation8 + $0x40] sm:$0xf]  ;;  %v3253_v30 = vor.u32 %v4302_v23, %v3252_v22  ;;  %1837 = vmatpush.bf16.msrb.mxu3 %v3797_v26  ;;  %v3897_v22 = vor.u32 %v4458_v16, %v3894_v17  ;;  %v4250_v23 = vld [vmem:[#allocation8 + $0x104] sm:$0xf]  ;;  %v3353_v26 = vor.u32 %v4322_v18, %v3350_v19 }
  0x50   :  { %v3508_v28 = vld [vmem:[#allocation8 + $0x480] sm:$0xf]  ;;  %v3606_v25 = vld [vmem:[#allocation8 + $0x560] sm:$0xf0] }
  0x51   :  { %v4366_v29 = vld [vmem:[#allocation8 + $0x49c] sm:$0xf0]  ;;  %1812 = vmatpush.bf16.msrb.mxu1 %v3253_v30  ;;  %v4314_v30 = vld [vmem:[#allocation8 + $0x304] sm:$0xf] }
  0x52   :  { %v4230_v31 = vld [vmem:[#allocation8 + $0x5c] sm:$0xf0]  ;;  %v3509_v36 = vor.u32 %v4366_v29, %v3508_v28  ;;  %v4450_v28 = vld [vmem:[#allocation8 + $0x744] sm:$0xf] }
  0x53   :  { %v3764_v32 = vld [vmem:[#allocation8 + $0x680] sm:$0xf]  ;;  %v2965_v38 = vor.u32 %v4230_v31, %v2964_v27  ;;  %v3062_v27 = vld [vmem:[#allocation8 + $0x120] sm:$0xf0] }
  0x54   :  { %v4430_v33 = vld [vmem:[#allocation8 + $0x69c] sm:$0xf0]  ;;  %1825 = vmatpush.bf16.msrb.mxu2 %v3509_v36  ;;  %v3862_v29 = vld [vmem:[#allocation8 + $0x760] sm:$0xf0] }
  0x55   :  { %v3220_v34 = vld [vmem:[#allocation8 + $0x240] sm:$0xf]  ;;  %v3765_v39 = vor.u32 %v4430_v33, %v3764_v32  ;;  %1800 = vmatpush.bf16.msrb.mxu0 %v2965_v38  ;;  %v3318_v31 = vld [vmem:[#allocation8 + $0x320] sm:$0xf0]  ;;  %v3609_v32 = vor.u32 %v4386_v24, %v3606_v25  ;;  %v3065_v33 = vor.u32 %v4250_v23, %v3062_v27 }
  0x56   :  { %v4294_v35 = vld [vmem:[#allocation8 + $0x25c] sm:$0xf0]  ;;  %v4378_v36 = vld [vmem:[#allocation8 + $0x504] sm:$0xf]  ;;  %v3321_v38 = vor.u32 %v4314_v30, %v3318_v31 }
  0x57   :  { %v2932_v37 = vld [vmem:[#allocation8] sm:$0xf]  ;;  %v3221_v43 = vor.u32 %v4294_v35, %v3220_v34  ;;  %1838 = vmatpush.bf16.msrb.mxu3 %v3765_v39  ;;  %v3865_v34 = vor.u32 %v4450_v28, %v3862_v29  ;;  %v4242_v35 = vld [vmem:[#allocation8 + $0xc4] sm:$0xf] }
  0x58   :  { %v4222_v40 = vld [vmem:[#allocation8 + $0x1c] sm:$0xf0]  ;;  %v3030_v39 = vld [vmem:[#allocation8 + $0xe0] sm:$0xf0] }
  0x59   :  { %v3476_v41 = vld [vmem:[#allocation8 + $0x440] sm:$0xf]  ;;  %v2933_v53 = vor.u32 %v4222_v40, %v2932_v37  ;;  %1813 = vmatpush.bf16.msrb.mxu1 %v3221_v43  ;;  %v3574_v37 = vld [vmem:[#allocation8 + $0x520] sm:$0xf0] }
  0x5a   :  { %v4358_v42 = vld [vmem:[#allocation8 + $0x45c] sm:$0xf0]  ;;  %v4442_v40 = vld [vmem:[#allocation8 + $0x704] sm:$0xf] }
  0x5b   :  { %v3188_v44 = vld [vmem:[#allocation8 + $0x200] sm:$0xf]  ;;  %v3477_v52 = vor.u32 %v4358_v42, %v3476_v41  ;;  %1801 = vmatpush.bf16.msrb.mxu0 %v2933_v53  ;;  %v3830_v41 = vld [vmem:[#allocation8 + $0x720] sm:$0xf0] }
  0x5c   :  { %v3732_v45 = vld [vmem:[#allocation8 + $0x640] sm:$0xf]  ;;  %v4306_v42 = vld [vmem:[#allocation8 + $0x2c4] sm:$0xf] }
  0x5d   :  { %v4422_v46 = vld [vmem:[#allocation8 + $0x65c] sm:$0xf0]  ;;  %1826 = vmatpush.bf16.msrb.mxu2 %v3477_v52  ;;  %v3286_v43 = vld [vmem:[#allocation8 + $0x2e0] sm:$0xf0]  ;;  %v3001_v52 = vor.u32 %v4234_v48, %v2998_v49  ;;  %v4335_v48 = vld [vmem:[#allocation8 + $0x3a4] sm:$0xf0] }
  0x5e   :  { %v4286_v47 = vld [vmem:[#allocation8 + $0x21c] sm:$0xf0]  ;;  %v3733_v54 = vor.u32 %v4422_v46, %v3732_v45  ;;  %v3033_v45 = vor.u32 %v4242_v35, %v3030_v39  ;;  %v3833_v46 = vor.u32 %v4442_v40, %v3830_v41  ;;  %v3254_v51 = vld [vmem:[#allocation8 + $0x2a0] sm:$0xf0]  ;;  %v3420_v35 = vld [vmem:[#allocation8 + $0x3c8] sm:$0xf] }
  0x5f   :  { %v3444_v56 = vld [vmem:[#allocation8 + $0x400] sm:$0xf]  ;;  %v3189_v59 = vor.u32 %v4286_v47, %v3188_v44  ;;  %1846 = vmatpush.bf16.msra.mxu0 %v3161_v60  ;;  %v3577_v44 = vor.u32 %v4378_v36, %v3574_v37  ;;  %v3289_v47 = vor.u32 %v4306_v42, %v3286_v43  ;;  %v3257_v53 = vor.u32 %v4298_v50, %v3254_v51  ;;  %v3542_v55 = vld [vmem:[#allocation8 + $0x4e0] sm:$0xf0]  ;;  %v4343_v36 = vld [vmem:[#allocation8 + $0x3e4] sm:$0xf0] }
  0x60   :  { %v4350_v57 = vld [vmem:[#allocation8 + $0x41c] sm:$0xf0]  ;;  %1839 = vmatpush.bf16.msrb.mxu3 %v3733_v54  ;;  %v4370_v54 = vld [vmem:[#allocation8 + $0x4c4] sm:$0xf]  ;;  %v3421_v43 = vor.u32 %v4343_v36, %v3420_v35 }
  0x61   :  { %v3700_v58 = vld [vmem:[#allocation8 + $0x600] sm:$0xf]  ;;  %v3445_v6 = vor.u32 %v4350_v57, %v3444_v56  ;;  %1814 = vmatpush.bf16.msrb.mxu1 %v3189_v59  ;;  %v4434_v56 = vld [vmem:[#allocation8 + $0x6c4] sm:$0xf]  ;;  %v3545_v57 = vor.u32 %v4370_v54, %v3542_v55  ;;  %v3676_v54 = vld [vmem:[#allocation8 + $0x5c8] sm:$0xf] }
  0x62   :  { %v4414_v61 = vld [vmem:[#allocation8 + $0x61c] sm:$0xf0]  ;;  %v4226_v60 = vld [vmem:[#allocation8 + $0x44] sm:$0xf]  ;;  %v4407_v55 = vld [vmem:[#allocation8 + $0x5e4] sm:$0xf0] }
  0x63   :  { %v3701_v7 = vor.u32 %v4414_v61, %v3700_v58  ;;  %1827 = vmatpush.bf16.msrb.mxu2 %v3445_v6  ;;  %1847 = vmatpush.bf16.msra.mxu0 %v3129_v9  ;;  %v3798_v58 = vld [vmem:[#allocation8 + $0x6e0] sm:$0xf0] }
  0x64   :  { %v3801_v59 = vor.u32 %v4434_v56, %v3798_v58  ;;  %v2966_v61 = vld [vmem:[#allocation8 + $0x60] sm:$0xf0]  ;;  %v3932_v56 = vld [vmem:[#allocation8 + $0x7c8] sm:$0xf] }
  0x65   :  { %1859 = vmatpush.bf16.msra.mxu1 %v3417_v0  ;;  %1840 = vmatpush.bf16.msrb.mxu3 %v3701_v7  ;;  %v2969_v62 = vor.u32 %v4226_v60, %v2966_v61  ;;  %v4290_v63 = vld [vmem:[#allocation8 + $0x244] sm:$0xf]  ;;  %v4471_v60 = vld [vmem:[#allocation8 + $0x7e4] sm:$0xf0] }
  0x66   :  { %v3222_v0 = vld [vmem:[#allocation8 + $0x260] sm:$0xf0]  ;;  %v3100_v61 = vld [vmem:[#allocation8 + $0x148] sm:$0xf] }
  0x67   :  { %1872 = vmatpush.bf16.msra.mxu2 %v3673_v8  ;;  %1848 = vmatpush.bf16.msra.mxu0 %v3097_v21  ;;  %v3225_v1 = vor.u32 %v4290_v63, %v3222_v0  ;;  %v4362_v2 = vld [vmem:[#allocation8 + $0x484] sm:$0xf]  ;;  %v3356_v0 = vld [vmem:[#allocation8 + $0x348] sm:$0xf] }
  0x68   :  { %v3510_v3 = vld [vmem:[#allocation8 + $0x4a0] sm:$0xf0] }
  0x69   :  { %1885 = vmatpush.bf16.msra.mxu3 %v3929_v10  ;;  %1860 = vmatpush.bf16.msra.mxu1 %v3385_v14  ;;  %v4426_v4 = vld [vmem:[#allocation8 + $0x684] sm:$0xf]  ;;  %v3513_v5 = vor.u32 %v4362_v2, %v3510_v3  ;;  %v3677_v3 = vor.u32 %v4407_v55, %v3676_v54  ;;  %v4231_v54 = vld [vmem:[#allocation8 + $0x64] sm:$0xf0] }
  0x6a   :  { %v3766_v6 = vld [vmem:[#allocation8 + $0x6a0] sm:$0xf0]  ;;  %v3228_v55 = vld [vmem:[#allocation8 + $0x248] sm:$0xf] }
  0x6b   :  { %1873 = vmatpush.bf16.msra.mxu2 %v3641_v20  ;;  %1849 = vmatpush.bf16.msra.mxu0 %v3065_v33  ;;  %v3769_v7 = vor.u32 %v4426_v4, %v3766_v6  ;;  %v4218_v8 = vld [vmem:[#allocation8 + $0x4] sm:$0xf]  ;;  %v4279_v33 = vld [vmem:[#allocation8 + $0x1e4] sm:$0xf0] }
  0x6c   :  { %v2934_v9 = vld [vmem:[#allocation8 + $0x20] sm:$0xf0] }
  0x6d   :  { %1886 = vmatpush.bf16.msra.mxu3 %v3897_v22  ;;  %1861 = vmatpush.bf16.msra.mxu1 %v3353_v26  ;;  %v4282_v10 = vld [vmem:[#allocation8 + $0x204] sm:$0xf]  ;;  %v2937_v11 = vor.u32 %v4218_v8, %v2934_v9  ;;  %v126_v26 = vld [vmem:[#allocation7] sm:$0xf]  ;;  %v4399_v8 = vld [vmem:[#allocation8 + $0x5a4] sm:$0xf0] }
  0x6e   :  { %v3190_v12 = vld [vmem:[#allocation8 + $0x220] sm:$0xf0]  ;;  %v128_v27 = vperm.slane %v126_v26, 0  ;;  %v129_v28 = vperm.slane %v126_v26, 1  ;;  %v130_v39 = vperm.slane %v126_v26, 2  ;;  %v131_v42 = vperm.slane %v126_v26, 3 }
  0x6f   :  { %1874 = vmatpush.bf16.msra.mxu2 %v3609_v32  ;;  %1850 = vmatpush.bf16.msra.mxu0 %v3033_v45  ;;  %v3193_v13 = vor.u32 %v4282_v10, %v3190_v12  ;;  %v4354_v14 = vld [vmem:[#allocation8 + $0x444] sm:$0xf]  ;;  %v3164_v32 = vld [vmem:[#allocation8 + $0x1c8] sm:$0xf] }
  0x70   :  { %v3478_v15 = vld [vmem:[#allocation8 + $0x460] sm:$0xf0]  ;;  %v3165_v40 = vor.u32 %v4279_v33, %v3164_v32  ;;  %v4271_v45 = vld [vmem:[#allocation8 + $0x1a4] sm:$0xf0] }
  0x71   :  { %1887 = vmatpush.bf16.msra.mxu3 %v3865_v34  ;;  %1862 = vmatpush.bf16.msra.mxu1 %v3321_v38  ;;  %v3481_v16 = vor.u32 %v4354_v14, %v3478_v15  ;;  %v4418_v17 = vld [vmem:[#allocation8 + $0x644] sm:$0xf]  ;;  %v3900_v9 = vld [vmem:[#allocation8 + $0x788] sm:$0xf] }
  0x72   :  { %v3734_v18 = vld [vmem:[#allocation8 + $0x660] sm:$0xf0]  ;;  %v4463_v12 = vld [vmem:[#allocation8 + $0x7a4] sm:$0xf0] }
  0x73   :  { %1875 = vmatpush.bf16.msra.mxu2 %v3577_v44  ;;  %1851 = vmatpush.bf16.msra.mxu0 %v3001_v52  ;;  %v3737_v19 = vor.u32 %v4418_v17, %v3734_v18  ;;  %v4346_v20 = vld [vmem:[#allocation8 + $0x404] sm:$0xf]  ;;  %v3132_v44 = vld [vmem:[#allocation8 + $0x188] sm:$0xf] }
  0x74   :  { %v3446_v21 = vld [vmem:[#allocation8 + $0x420] sm:$0xf0]  ;;  %v4255_v14 = vld [vmem:[#allocation8 + $0x124] sm:$0xf0] }
  0x75   :  { %1888 = vmatpush.bf16.msra.mxu3 %v3833_v46  ;;  %1863 = vmatpush.bf16.msra.mxu1 %v3289_v47  ;;  %v3449_v22 = vor.u32 %v4346_v20, %v3446_v21  ;;  %v4410_v23 = vld [vmem:[#allocation8 + $0x604] sm:$0xf]  ;;  %v3388_v47 = vld [vmem:[#allocation8 + $0x388] sm:$0xf]  ;;  %v3901_v20 = vor.u32 %v4463_v12, %v3900_v9  ;;  %v4339_v9 = vld [vmem:[#allocation8 + $0x3cc] sm:$0xf] }
  0x76   :  { %v3702_v24 = vld [vmem:[#allocation8 + $0x620] sm:$0xf0]  ;;  %v3324_v15 = vld [vmem:[#allocation8 + $0x308] sm:$0xf] }
  0x77   :  { %1876 = vmatpush.bf16.msra.mxu2 %v3545_v57  ;;  %1852 = vmatpush.bf16.msra.mxu0 %v2969_v62  ;;  %v3705_v25 = vor.u32 %v4410_v23, %v3702_v24  ;;  %v4263_v62 = vld [vmem:[#allocation8 + $0x164] sm:$0xf0] }
  0x78   :  { %v3101_v6 = vor.u32 %v4263_v62, %v3100_v61  ;;  %v4391_v23 = vld [vmem:[#allocation8 + $0x564] sm:$0xf0] }
  0x79   :  { %1864 = vmatpush.bf16.msra.mxu1 %v3257_v53  ;;  %1889 = vmatpush.bf16.msra.mxu3 %v3801_v59  ;;  %v3133_v53 = vor.u32 %v4271_v45, %v3132_v44  ;;  %v3389_v59 = vor.u32 %v4335_v48, %v3388_v47  ;;  %v4455_v26 = vld [vmem:[#allocation8 + $0x764] sm:$0xf0] }
  0x7a   :  { %v3580_v33 = vld [vmem:[#allocation8 + $0x508] sm:$0xf] }
  0x7b   :  { %1877 = vmatpush.bf16.msra.mxu2 %v3513_v5  ;;  %1853 = vmatpush.bf16.msra.mxu0 %v2937_v11  ;;  %v3933_v5 = vor.u32 %v4471_v60, %v3932_v56  ;;  %v3548_v47 = vld [vmem:[#allocation8 + $0x4c8] sm:$0xf] }
  0x7c   :  { %v4375_v48 = vld [vmem:[#allocation8 + $0x4e4] sm:$0xf0] }
  0x7d   :  { %1865 = vmatpush.bf16.msra.mxu1 %v3225_v1  ;;  %1890 = vmatpush.bf16.msra.mxu3 %v3769_v7  ;;  %v4327_v1 = vld [vmem:[#allocation8 + $0x364] sm:$0xf0] }
  0x7e   :  { %v3644_v7 = vld [vmem:[#allocation8 + $0x588] sm:$0xf]  ;;  %v3357_v11 = vor.u32 %v4327_v1, %v3356_v0 }
  0x7f   :  { %1878 = vmatpush.bf16.msra.mxu2 %v3481_v16  ;;  %v4319_v16 = vld [vmem:[#allocation8 + $0x324] sm:$0xf0]  ;;  %v3645_v18 = vor.u32 %v4399_v8, %v3644_v7  ;;  %v3166_v8 = vld [vmem:[#allocation8 + $0x1e8] sm:$0xf0] }
  0x80   :  { %v3325_v24 = vor.u32 %v4319_v16, %v3324_v15  ;;  %v4295_v56 = vld [vmem:[#allocation8 + $0x264] sm:$0xf0] }
  0x81   :  { %1866 = vmatpush.bf16.msra.mxu1 %v3193_v13  ;;  %1891 = vmatpush.bf16.msra.mxu3 %v3737_v19  ;;  %v3068_v13 = vld [vmem:[#allocation8 + $0x108] sm:$0xf] }
  0x82   :  { %v3069_v21 = vor.u32 %v4255_v14, %v3068_v13  ;;  %v4367_v60 = vld [vmem:[#allocation8 + $0x4a4] sm:$0xf0] }
  0x83   :  { %1879 = vmatpush.bf16.msra.mxu2 %v3449_v22  ;;  %v3612_v22 = vld [vmem:[#allocation8 + $0x548] sm:$0xf] }
  0x84   :  { %v3772_v61 = vld [vmem:[#allocation8 + $0x688] sm:$0xf] }
  0x85   :  { %1892 = vmatpush.bf16.msra.mxu3 %v3705_v25  ;;  %v3868_v25 = vld [vmem:[#allocation8 + $0x748] sm:$0xf] }
  0x86   :  { %v3869_v32 = vor.u32 %v4455_v26, %v3868_v25  ;;  %v4431_v0 = vld [vmem:[#allocation8 + $0x6a4] sm:$0xf0]  ;;  %v3390_v25 = vld [vmem:[#allocation8 + $0x3a8] sm:$0xf0] }
  0x87   :  { %v2940_v1 = vld [vmem:[#allocation8 + $0x8] sm:$0xf]  ;;  %v3773_v12 = vor.u32 %v4431_v0, %v3772_v61  ;;  %v3870_v0 = vld [vmem:[#allocation8 + $0x768] sm:$0xf0] }
  0x88   :  { %v3484_v13 = vld [vmem:[#allocation8 + $0x448] sm:$0xf] }
  0x89   :  { %v4359_v14 = vld [vmem:[#allocation8 + $0x464] sm:$0xf0] }
  0xa4   :  { %v189_v29 = vpop.f32.mrf.mxu0 }
  0xa5   :  { %v190_v30 = vadd.f32 %v189_v29, %v128_v27  ;;  %v202_v31 = vpop.f32.mrf.mxu1  ;;  %v3036_v27 = vld [vmem:[#allocation8 + $0xc8] sm:$0xf] }
  0xa6   :  { %v203_v34 = vadd.f32 %v202_v31, %v129_v28  ;;  %v4247_v28 = vld [vmem:[#allocation8 + $0xe4] sm:$0xf0]  ;;  %v3613_v31 = vor.u32 %v4391_v23, %v3612_v22  ;;  %v3485_v22 = vor.u32 %v4359_v14, %v3484_v13  ;;  %v3134_v23 = vld [vmem:[#allocation8 + $0x1a8] sm:$0xf0] }
  0xa7   :  { %v232_v37 = vmax.f32 %v190_v30, 0.0  ;;  %v3292_v29 = vld [vmem:[#allocation8 + $0x2c8] sm:$0xf]  ;;  %v3037_v35 = vor.u32 %v4247_v28, %v3036_v27  ;;  %v4443_v13 = vld [vmem:[#allocation8 + $0x70c] sm:$0xf] }
  0xa8   :  { %v233_v38 = vmax.f32 %v203_v34, 0.0  ;;  %v4311_v30 = vld [vmem:[#allocation8 + $0x2e4] sm:$0xf0]  ;;  %v3838_v14 = vld [vmem:[#allocation8 + $0x728] sm:$0xf0] }
  0xa9   :  { %v4809_v41 = vpack.c.bf16 %v232_v37, %v232_v37  ;;  %v4383_v34 = vld [vmem:[#allocation8 + $0x524] sm:$0xf0]  ;;  %v3293_v36 = vor.u32 %v4311_v30, %v3292_v29 }
  0xaa   :  { %v4811_v46 = vpack.c.bf16 %v233_v38, %v233_v38  ;;  %v3836_v37 = vld [vmem:[#allocation8 + $0x708] sm:$0xf]  ;;  %v3581_v44 = vor.u32 %v4383_v34, %v3580_v33 }
  0xab   :  { %1802 = vmatmul.bf16.vlgmr.msrb.gmra.mxu0 %v4809_v41  ;;  %v4447_v38 = vld [vmem:[#allocation8 + $0x724] sm:$0xf0] }
  0xac   :  { %v215_v49 = vpop.f32.mrf.mxu2  ;;  %1815 = vmatmul.bf16.vlgmr.msrb.gmra.mxu1 %v4811_v46  ;;  %1898 = vmatpush.bf16.msrb.mxu0 %v3165_v40  ;;  %v191_v52 = vpop.f32.mrf.mxu0  ;;  %v4239_v40 = vld [vmem:[#allocation8 + $0xa4] sm:$0xf0]  ;;  %v3837_v45 = vor.u32 %v4447_v38, %v3836_v37  ;;  %v4259_v37 = vld [vmem:[#allocation8 + $0x14c] sm:$0xf] }
  0xad   :  { %v216_v50 = vadd.f32 %v215_v49, %v130_v39  ;;  %v228_v51 = vpop.f32.mrf.mxu3  ;;  %1911 = vmatpush.bf16.msrb.mxu1 %v3421_v43  ;;  %v204_v58 = vpop.f32.mrf.mxu1  ;;  %v3004_v39 = vld [vmem:[#allocation8 + $0x88] sm:$0xf] }
  0xae   :  { %v229_v57 = vadd.f32 %v228_v51, %v131_v42  ;;  %v3260_v42 = vld [vmem:[#allocation8 + $0x288] sm:$0xf]  ;;  %v3005_v49 = vor.u32 %v4239_v40, %v3004_v39  ;;  %v3102_v39 = vld [vmem:[#allocation8 + $0x168] sm:$0xf0] }
  0xaf   :  { %v234_v63 = vmax.f32 %v216_v50, 0.0  ;;  %v4303_v43 = vld [vmem:[#allocation8 + $0x2a4] sm:$0xf0]  ;;  %v4323_v40 = vld [vmem:[#allocation8 + $0x34c] sm:$0xf] }
  0xb0   :  { %v235_v2 = vmax.f32 %v229_v57, 0.0  ;;  %1899 = vmatpush.bf16.msrb.mxu0 %v3133_v53  ;;  %v3261_v50 = vor.u32 %v4303_v43, %v3260_v42  ;;  %v3804_v51 = vld [vmem:[#allocation8 + $0x6c8] sm:$0xf]  ;;  %v3549_v57 = vor.u32 %v4375_v48, %v3548_v47  ;;  %v3358_v42 = vld [vmem:[#allocation8 + $0x368] sm:$0xf0] }
  0xb1   :  { %v4815_v4 = vpack.c.bf16 %v234_v63, %v234_v63  ;;  %1912 = vmatpush.bf16.msrb.mxu1 %v3389_v59  ;;  %v4439_v52 = vld [vmem:[#allocation8 + $0x6e4] sm:$0xf0]  ;;  %v3229_v63 = vor.u32 %v4295_v56, %v3228_v55  ;;  %v4395_v47 = vld [vmem:[#allocation8 + $0x58c] sm:$0xf] }
  0xb2   :  { %v4817_v10 = vpack.c.bf16 %v235_v2, %v235_v2  ;;  %v2972_v53 = vld [vmem:[#allocation8 + $0x48] sm:$0xf]  ;;  %v3805_v58 = vor.u32 %v4439_v52, %v3804_v51  ;;  %v3646_v48 = vld [vmem:[#allocation8 + $0x5a8] sm:$0xf0] }
  0xb3   :  { %1828 = vmatmul.bf16.vlgmr.msrb.gmra.mxu2 %v4815_v4  ;;  %v3516_v59 = vld [vmem:[#allocation8 + $0x488] sm:$0xf]  ;;  %v2973_v62 = vor.u32 %v4231_v54, %v2972_v53  ;;  %v4459_v51 = vld [vmem:[#allocation8 + $0x78c] sm:$0xf] }
  0xb4   :  { %1841 = vmatmul.bf16.vlgmr.msrb.gmra.mxu3 %v4817_v10  ;;  %1924 = vmatpush.bf16.msrb.mxu2 %v3677_v3  ;;  %v217_v17 = vpop.f32.mrf.mxu2  ;;  %v4223_v2 = vld [vmem:[#allocation8 + $0x24] sm:$0xf0]  ;;  %v3517_v7 = vor.u32 %v4367_v60, %v3516_v59  ;;  %v3902_v52 = vld [vmem:[#allocation8 + $0x7a8] sm:$0xf0] }
  0xb5   :  { %1937 = vmatpush.bf16.msrb.mxu3 %v3933_v5  ;;  %v230_v19 = vpop.f32.mrf.mxu3  ;;  %1900 = vmatpush.bf16.msrb.mxu0 %v3101_v6  ;;  %v3196_v3 = vld [vmem:[#allocation8 + $0x208] sm:$0xf]  ;;  %v4275_v6 = vld [vmem:[#allocation8 + $0x1cc] sm:$0xf]  ;;  %v2941_v15 = vor.u32 %v4223_v2, %v2940_v1 }
  0xb6   :  { %1913 = vmatpush.bf16.msrb.mxu1 %v3357_v11  ;;  %v4287_v5 = vld [vmem:[#allocation8 + $0x224] sm:$0xf0]  ;;  %v3422_v11 = vld [vmem:[#allocation8 + $0x3e8] sm:$0xf0]  ;;  %v3169_v19 = vor.u32 %v4275_v6, %v3166_v8 }
  0xb7   :  { %v3197_v16 = vor.u32 %v4287_v5, %v3196_v3  ;;  %v3740_v17 = vld [vmem:[#allocation8 + $0x648] sm:$0xf]  ;;  %v4251_v53 = vld [vmem:[#allocation8 + $0x10c] sm:$0xf] }
  0xb8   :  { %1925 = vmatpush.bf16.msrb.mxu2 %v3645_v18  ;;  %v4423_v18 = vld [vmem:[#allocation8 + $0x664] sm:$0xf0]  ;;  %v3070_v54 = vld [vmem:[#allocation8 + $0x128] sm:$0xf0] }
  0xb9   :  { %1938 = vmatpush.bf16.msrb.mxu3 %v3901_v20  ;;  %1901 = vmatpush.bf16.msrb.mxu0 %v3069_v21  ;;  %v3425_v20 = vor.u32 %v4339_v9, %v3422_v11  ;;  %v4267_v21 = vld [vmem:[#allocation8 + $0x18c] sm:$0xf]  ;;  %v3741_v26 = vor.u32 %v4423_v18, %v3740_v17  ;;  %v3452_v27 = vld [vmem:[#allocation8 + $0x408] sm:$0xf]  ;;  %v3073_v61 = vor.u32 %v4251_v53, %v3070_v54 }
  0xba   :  { %1914 = vmatpush.bf16.msrb.mxu1 %v3325_v24  ;;  %v4331_v24 = vld [vmem:[#allocation8 + $0x38c] sm:$0xf]  ;;  %v4351_v28 = vld [vmem:[#allocation8 + $0x424] sm:$0xf0]  ;;  %v3137_v33 = vor.u32 %v4267_v21, %v3134_v23 }
  0xbb   :  { %1854 = vmatmul.bf16.vlgmr.msra.gmra.mxu0 %v4809_v41  ;;  %v3708_v29 = vld [vmem:[#allocation8 + $0x608] sm:$0xf]  ;;  %v3393_v34 = vor.u32 %v4331_v24, %v3390_v25  ;;  %v3453_v38 = vor.u32 %v4351_v28, %v3452_v27  ;;  %v4315_v55 = vld [vmem:[#allocation8 + $0x30c] sm:$0xf] }
  0xbc   :  { %1926 = vmatpush.bf16.msrb.mxu2 %v3613_v31  ;;  %1867 = vmatmul.bf16.vlgmr.msra.gmra.mxu1 %v4811_v46  ;;  %v4415_v30 = vld [vmem:[#allocation8 + $0x624] sm:$0xf0]  ;;  %v4403_v31 = vld [vmem:[#allocation8 + $0x5cc] sm:$0xf] }
  0xbd   :  { %1939 = vmatpush.bf16.msrb.mxu3 %v3869_v32  ;;  %1902 = vmatpush.bf16.msrb.mxu0 %v3037_v35  ;;  %v3678_v32 = vld [vmem:[#allocation8 + $0x5e8] sm:$0xf0]  ;;  %v3709_v43 = vor.u32 %v4415_v30, %v3708_v29 }
  0xbe   :  { %1915 = vmatpush.bf16.msrb.mxu1 %v3293_v36  ;;  %v4467_v35 = vld [vmem:[#allocation8 + $0x7cc] sm:$0xf] }
  0xbf   :  { %v3934_v36 = vld [vmem:[#allocation8 + $0x7e8] sm:$0xf0] }
  0xc0   :  { %1927 = vmatpush.bf16.msrb.mxu2 %v3581_v44  ;;  %v3681_v44 = vor.u32 %v4403_v31, %v3678_v32  ;;  %v3326_v56 = vld [vmem:[#allocation8 + $0x328] sm:$0xf0] }
  0xc1   :  { %1940 = vmatpush.bf16.msrb.mxu3 %v3837_v45  ;;  %1903 = vmatpush.bf16.msrb.mxu0 %v3005_v49  ;;  %v3937_v45 = vor.u32 %v4467_v35, %v3934_v36  ;;  %v3105_v49 = vor.u32 %v4259_v37, %v3102_v39  ;;  %v4387_v59 = vld [vmem:[#allocation8 + $0x54c] sm:$0xf] }
  0xc2   :  { %1916 = vmatpush.bf16.msrb.mxu1 %v3261_v50  ;;  %v3361_v50 = vor.u32 %v4323_v40, %v3358_v42  ;;  %v3614_v60 = vld [vmem:[#allocation8 + $0x568] sm:$0xf0] }
  0xc3   :  { %1880 = vmatmul.bf16.vlgmr.msra.gmra.mxu2 %v4815_v4  ;;  %v4243_v1 = vld [vmem:[#allocation8 + $0xcc] sm:$0xf]  ;;  %v3617_v6 = vor.u32 %v4387_v59, %v3614_v60  ;;  %v3140_v59 = vld [vmem:[#allocation8 + $0x190] sm:$0xf] }
  0xc4   :  { %1893 = vmatmul.bf16.vlgmr.msra.gmra.mxu3 %v4817_v10  ;;  %1928 = vmatpush.bf16.msrb.mxu2 %v3549_v57  ;;  %v3649_v57 = vor.u32 %v4395_v47, %v3646_v48  ;;  %v3038_v2 = vld [vmem:[#allocation8 + $0xe8] sm:$0xf0]  ;;  %v4280_v47 = vld [vmem:[#allocation8 + $0x1ec] sm:$0xf0] }
  0xc5   :  { %1941 = vmatpush.bf16.msrb.mxu3 %v3805_v58  ;;  %1904 = vmatpush.bf16.msrb.mxu0 %v2973_v62  ;;  %v3905_v58 = vor.u32 %v4459_v51, %v3902_v52  ;;  %v3329_v62 = vor.u32 %v4315_v55, %v3326_v56  ;;  %v4307_v3 = vld [vmem:[#allocation8 + $0x2cc] sm:$0xf]  ;;  %v3041_v11 = vor.u32 %v4243_v1, %v3038_v2  ;;  %v3428_v48 = vld [vmem:[#allocation8 + $0x3d0] sm:$0xf] }
  0xc6   :  { %1917 = vmatpush.bf16.msrb.mxu1 %v3229_v63  ;;  %v4451_v63 = vld [vmem:[#allocation8 + $0x74c] sm:$0xf] }
  0xc7   :  { %v3294_v5 = vld [vmem:[#allocation8 + $0x2e8] sm:$0xf0] }
  0xc8   :  { %1929 = vmatpush.bf16.msrb.mxu2 %v3517_v7  ;;  %v3873_v7 = vor.u32 %v4451_v63, %v3870_v0  ;;  %v4379_v8 = vld [vmem:[#allocation8 + $0x50c] sm:$0xf]  ;;  %v4336_v63 = vld [vmem:[#allocation8 + $0x3ac] sm:$0xf0] }
  0xc9   :  { %1942 = vmatpush.bf16.msrb.mxu3 %v3773_v12  ;;  %1905 = vmatpush.bf16.msrb.mxu0 %v2941_v15  ;;  %v3582_v9 = vld [vmem:[#allocation8 + $0x528] sm:$0xf0]  ;;  %v3297_v12 = vor.u32 %v4307_v3, %v3294_v5 }
  0xca   :  { %1918 = vmatpush.bf16.msrb.mxu1 %v3197_v16  ;;  %v4235_v15 = vld [vmem:[#allocation8 + $0x8c] sm:$0xf] }
  0xcb   :  { %v3006_v16 = vld [vmem:[#allocation8 + $0xa8] sm:$0xf0] }
  0xcc   :  { %1930 = vmatpush.bf16.msrb.mxu2 %v3485_v22  ;;  %1906 = vmatmul.bf16.vlgmr.msrb.gmra.mxu0 %v4809_v41  ;;  %v4299_v17 = vld [vmem:[#allocation8 + $0x28c] sm:$0xf]  ;;  %v3009_v23 = vor.u32 %v4235_v15, %v3006_v16  ;;  %v4264_v15 = vld [vmem:[#allocation8 + $0x16c] sm:$0xf0] }
  0xcd   :  { %1950 = vmatpush.bf16.msra.mxu0 %v3169_v19  ;;  %1943 = vmatpush.bf16.msrb.mxu3 %v3741_v26  ;;  %v3262_v18 = vld [vmem:[#allocation8 + $0x2a8] sm:$0xf0]  ;;  %v3585_v19 = vor.u32 %v4379_v8, %v3582_v9 }
  0xce   :  { %1963 = vmatpush.bf16.msra.mxu1 %v3425_v20  ;;  %v3841_v20 = vor.u32 %v4443_v13, %v3838_v14  ;;  %v4371_v21 = vld [vmem:[#allocation8 + $0x4cc] sm:$0xf]  ;;  %v3265_v24 = vor.u32 %v4299_v17, %v3262_v18  ;;  %v3108_v14 = vld [vmem:[#allocation8 + $0x150] sm:$0xf] }
  0xcf   :  { %1919 = vmatmul.bf16.vlgmr.msrb.gmra.mxu1 %v4811_v46  ;;  %v3550_v22 = vld [vmem:[#allocation8 + $0x4e8] sm:$0xf0]  ;;  %v3364_v18 = vld [vmem:[#allocation8 + $0x350] sm:$0xf] }
  0xd0   :  { %1931 = vmatpush.bf16.msrb.mxu2 %v3453_v38  ;;  %v4435_v25 = vld [vmem:[#allocation8 + $0x6cc] sm:$0xf]  ;;  %v3553_v31 = vor.u32 %v4371_v21, %v3550_v22  ;;  %v3652_v21 = vld [vmem:[#allocation8 + $0x590] sm:$0xf] }
  0xd1   :  { %1951 = vmatpush.bf16.msra.mxu0 %v3137_v33  ;;  %1944 = vmatpush.bf16.msrb.mxu3 %v3709_v43  ;;  %v3806_v26 = vld [vmem:[#allocation8 + $0x6e8] sm:$0xf0]  ;;  %v4400_v22 = vld [vmem:[#allocation8 + $0x5ac] sm:$0xf0] }
  0xd2   :  { %1964 = vmatpush.bf16.msra.mxu1 %v3393_v34  ;;  %v4227_v27 = vld [vmem:[#allocation8 + $0x4c] sm:$0xf]  ;;  %v3809_v32 = vor.u32 %v4435_v25, %v3806_v26  ;;  %v4464_v25 = vld [vmem:[#allocation8 + $0x7ac] sm:$0xf0] }
  0xd3   :  { %1932 = vmatmul.bf16.vlgmr.msrb.gmra.mxu2 %v4815_v4  ;;  %v2974_v28 = vld [vmem:[#allocation8 + $0x68] sm:$0xf0] }
  0xd4   :  { %1976 = vmatpush.bf16.msra.mxu2 %v3681_v44  ;;  %1945 = vmatmul.bf16.vlgmr.msrb.gmra.mxu3 %v4817_v10  ;;  %v4291_v29 = vld [vmem:[#allocation8 + $0x24c] sm:$0xf]  ;;  %v2977_v36 = vor.u32 %v4227_v27, %v2974_v28  ;;  %v3172_v44 = vld [vmem:[#allocation8 + $0x1d0] sm:$0xf] }
  0xd5   :  { %1989 = vmatpush.bf16.msra.mxu3 %v3937_v45  ;;  %1952 = vmatpush.bf16.msra.mxu0 %v3105_v49  ;;  %v3230_v30 = vld [vmem:[#allocation8 + $0x268] sm:$0xf0]  ;;  %v4344_v49 = vld [vmem:[#allocation8 + $0x3ec] sm:$0xf0] }
  0xd6   :  { %1965 = vmatpush.bf16.msra.mxu1 %v3361_v50  ;;  %v4363_v33 = vld [vmem:[#allocation8 + $0x48c] sm:$0xf]  ;;  %v3233_v37 = vor.u32 %v4291_v29, %v3230_v30  ;;  %v3076_v27 = vld [vmem:[#allocation8 + $0x110] sm:$0xf]  ;;  %v3653_v29 = vor.u32 %v4400_v22, %v3652_v21  ;;  %v3174_v21 = vld [vmem:[#allocation8 + $0x1f0] sm:$0xf0] }
  0xd7   :  { %v3518_v34 = vld [vmem:[#allocation8 + $0x4a8] sm:$0xf0]  ;;  %v4256_v28 = vld [vmem:[#allocation8 + $0x12c] sm:$0xf0]  ;;  %v4340_v22 = vld [vmem:[#allocation8 + $0x3d4] sm:$0xf] }
  0xd8   :  { %1977 = vmatpush.bf16.msra.mxu2 %v3649_v57  ;;  %v4427_v35 = vld [vmem:[#allocation8 + $0x68c] sm:$0xf]  ;;  %v3521_v45 = vor.u32 %v4363_v33, %v3518_v34  ;;  %v3173_v57 = vor.u32 %v4280_v47, %v3172_v44  ;;  %v3332_v30 = vld [vmem:[#allocation8 + $0x310] sm:$0xf] }
  0xd9   :  { %1990 = vmatpush.bf16.msra.mxu3 %v3905_v58  ;;  %1953 = vmatpush.bf16.msra.mxu0 %v3073_v61  ;;  %v3774_v38 = vld [vmem:[#allocation8 + $0x6a8] sm:$0xf0]  ;;  %v3429_v58 = vor.u32 %v4344_v49, %v3428_v48  ;;  %v4272_v61 = vld [vmem:[#allocation8 + $0x1ac] sm:$0xf0] }
  0xda   :  { %1966 = vmatpush.bf16.msra.mxu1 %v3329_v62  ;;  %v4219_v39 = vld [vmem:[#allocation8 + $0xc] sm:$0xf]  ;;  %v3777_v50 = vor.u32 %v4427_v35, %v3774_v38  ;;  %v3396_v62 = vld [vmem:[#allocation8 + $0x390] sm:$0xf]  ;;  %v3141_v8 = vor.u32 %v4272_v61, %v3140_v59  ;;  %v3077_v35 = vor.u32 %v4256_v28, %v3076_v27 }
  0xdb   :  { %v2942_v40 = vld [vmem:[#allocation8 + $0x28] sm:$0xf0]  ;;  %v3397_v9 = vor.u32 %v4336_v63, %v3396_v62  ;;  %v3620_v33 = vld [vmem:[#allocation8 + $0x550] sm:$0xf] }
  0xdc   :  { %1978 = vmatpush.bf16.msra.mxu2 %v3617_v6  ;;  %v4283_v42 = vld [vmem:[#allocation8 + $0x20c] sm:$0xf]  ;;  %v2945_v53 = vor.u32 %v4219_v39, %v2942_v40  ;;  %v3684_v6 = vld [vmem:[#allocation8 + $0x5d0] sm:$0xf] }
  0xdd   :  { %1991 = vmatpush.bf16.msra.mxu3 %v3873_v7  ;;  %1954 = vmatpush.bf16.msra.mxu0 %v3041_v11  ;;  %v3198_v43 = vld [vmem:[#allocation8 + $0x228] sm:$0xf0]  ;;  %v4408_v7 = vld [vmem:[#allocation8 + $0x5ec] sm:$0xf0] }
  0xde   :  { %1967 = vmatpush.bf16.msra.mxu1 %v3297_v12  ;;  %v4355_v51 = vld [vmem:[#allocation8 + $0x44c] sm:$0xf]  ;;  %v3201_v54 = vor.u32 %v4283_v42, %v3198_v43  ;;  %v3940_v11 = vld [vmem:[#allocation8 + $0x7d0] sm:$0xf]  ;;  %v3685_v17 = vor.u32 %v4408_v7, %v3684_v6 }
  0xdf   :  { %v3486_v52 = vld [vmem:[#allocation8 + $0x468] sm:$0xf0]  ;;  %v4472_v12 = vld [vmem:[#allocation8 + $0x7ec] sm:$0xf0] }
  0xe0   :  { %1979 = vmatpush.bf16.msra.mxu2 %v3585_v19  ;;  %v4419_v55 = vld [vmem:[#allocation8 + $0x64c] sm:$0xf]  ;;  %v3489_v60 = vor.u32 %v4355_v51, %v3486_v52  ;;  %v4328_v19 = vld [vmem:[#allocation8 + $0x36c] sm:$0xf0] }
  0xe1   :  { %1992 = vmatpush.bf16.msra.mxu3 %v3841_v20  ;;  %1955 = vmatpush.bf16.msra.mxu0 %v3009_v23  ;;  %v3742_v56 = vld [vmem:[#allocation8 + $0x668] sm:$0xf0]  ;;  %v3941_v20 = vor.u32 %v4472_v12, %v3940_v11  ;;  %v3109_v23 = vor.u32 %v4264_v15, %v3108_v14  ;;  %v3365_v26 = vor.u32 %v4328_v19, %v3364_v18  ;;  %v4392_v34 = vld [vmem:[#allocation8 + $0x56c] sm:$0xf0] }
  0xe2   :  { %1968 = vmatpush.bf16.msra.mxu1 %v3265_v24  ;;  %v3745_v0 = vor.u32 %v4419_v55, %v3742_v56  ;;  %v4347_v1 = vld [vmem:[#allocation8 + $0x40c] sm:$0xf]  ;;  %v3908_v24 = vld [vmem:[#allocation8 + $0x790] sm:$0xf]  ;;  %v3621_v42 = vor.u32 %v4392_v34, %v3620_v33 }
  0xe3   :  { %v3454_v2 = vld [vmem:[#allocation8 + $0x428] sm:$0xf0]  ;;  %v3044_v39 = vld [vmem:[#allocation8 + $0xd0] sm:$0xf] }
  0xe4   :  { %1980 = vmatpush.bf16.msra.mxu2 %v3553_v31  ;;  %v4411_v3 = vld [vmem:[#allocation8 + $0x60c] sm:$0xf]  ;;  %v3457_v13 = vor.u32 %v4347_v1, %v3454_v2  ;;  %v4320_v31 = vld [vmem:[#allocation8 + $0x32c] sm:$0xf0] }
  0xe5   :  { %1993 = vmatpush.bf16.msra.mxu3 %v3809_v32  ;;  %1956 = vmatpush.bf16.msra.mxu0 %v2977_v36  ;;  %v3710_v5 = vld [vmem:[#allocation8 + $0x628] sm:$0xf0]  ;;  %v3909_v32 = vor.u32 %v4464_v25, %v3908_v24  ;;  %v3876_v36 = vld [vmem:[#allocation8 + $0x750] sm:$0xf]  ;;  %v3333_v38 = vor.u32 %v4320_v31, %v3332_v30  ;;  %v3430_v24 = vld [vmem:[#allocation8 + $0x3f0] sm:$0xf0] }
  0xe6   :  { %1969 = vmatpush.bf16.msra.mxu1 %v3233_v37  ;;  %v3713_v16 = vor.u32 %v4411_v3, %v3710_v5  ;;  %v4456_v37 = vld [vmem:[#allocation8 + $0x76c] sm:$0xf0]  ;;  %v3433_v33 = vor.u32 %v4340_v22, %v3430_v24  ;;  %v3590_v22 = vld [vmem:[#allocation8 + $0x530] sm:$0xf0] }
  0xe7   :  { %v4248_v40 = vld [vmem:[#allocation8 + $0xec] sm:$0xf0]  ;;  %v4444_v24 = vld [vmem:[#allocation8 + $0x714] sm:$0xf] }
  0xe8   :  { %1981 = vmatpush.bf16.msra.mxu2 %v3521_v45  ;;  %v3300_v43 = vld [vmem:[#allocation8 + $0x2d0] sm:$0xf]  ;;  %v3877_v45 = vor.u32 %v4456_v37, %v3876_v36  ;;  %v3045_v49 = vor.u32 %v4248_v40, %v3044_v39  ;;  %v4332_v36 = vld [vmem:[#allocation8 + $0x394] sm:$0xf] }
  0xe9   :  { %1994 = vmatpush.bf16.msra.mxu3 %v3777_v50  ;;  %1957 = vmatpush.bf16.msra.mxu0 %v2945_v53  ;;  %v4312_v44 = vld [vmem:[#allocation8 + $0x2ec] sm:$0xf0]  ;;  %v3398_v37 = vld [vmem:[#allocation8 + $0x3b0] sm:$0xf0] }
  0xea   :  { %1970 = vmatpush.bf16.msra.mxu1 %v3201_v54  ;;  %v3588_v47 = vld [vmem:[#allocation8 + $0x510] sm:$0xf]  ;;  %v3301_v52 = vor.u32 %v4312_v44, %v3300_v43  ;;  %v4404_v44 = vld [vmem:[#allocation8 + $0x5d4] sm:$0xf] }
  0xeb   :  { %v4384_v48 = vld [vmem:[#allocation8 + $0x52c] sm:$0xf0] }
  0xec   :  { %1982 = vmatpush.bf16.msra.mxu2 %v3489_v60  ;;  %1958 = vmatmul.bf16.vlgmr.msra.gmra.mxu0 %v4809_v41  ;;  %v3844_v50 = vld [vmem:[#allocation8 + $0x710] sm:$0xf]  ;;  %v3589_v55 = vor.u32 %v4384_v48, %v3588_v47  ;;  %v4468_v48 = vld [vmem:[#allocation8 + $0x7d4] sm:$0xf] }
  0xed   :  { %2002 = vmatpush.bf16.msrb.mxu0 %v3173_v57  ;;  %1995 = vmatpush.bf16.msra.mxu3 %v3745_v0  ;;  %v4448_v51 = vld [vmem:[#allocation8 + $0x72c] sm:$0xf0] }
  0xee   :  { %2015 = vmatpush.bf16.msrb.mxu1 %v3429_v58  ;;  %v3012_v53 = vld [vmem:[#allocation8 + $0x90] sm:$0xf]  ;;  %v3845_v58 = vor.u32 %v4448_v51, %v3844_v50  ;;  %v3401_v50 = vor.u32 %v4332_v36, %v3398_v37  ;;  %v4436_v36 = vld [vmem:[#allocation8 + $0x6d4] sm:$0xf] }
  0xef   :  { %1971 = vmatmul.bf16.vlgmr.msra.gmra.mxu1 %v4811_v46  ;;  %v4240_v54 = vld [vmem:[#allocation8 + $0xac] sm:$0xf0]  ;;  %v3814_v37 = vld [vmem:[#allocation8 + $0x6f0] sm:$0xf0] }
  0xf0   :  { %1983 = vmatpush.bf16.msra.mxu2 %v3457_v13  ;;  %v3268_v56 = vld [vmem:[#allocation8 + $0x290] sm:$0xf]  ;;  %v3013_v61 = vor.u32 %v4240_v54, %v3012_v53  ;;  %v3110_v53 = vld [vmem:[#allocation8 + $0x170] sm:$0xf0] }
  0xf1   :  { %2003 = vmatpush.bf16.msrb.mxu0 %v3141_v8  ;;  %1996 = vmatpush.bf16.msra.mxu3 %v3713_v16  ;;  %v4304_v57 = vld [vmem:[#allocation8 + $0x2ac] sm:$0xf0] }
  0xf2   :  { %2016 = vmatpush.bf16.msrb.mxu1 %v3397_v9  ;;  %v3556_v59 = vld [vmem:[#allocation8 + $0x4d0] sm:$0xf]  ;;  %v3269_v0 = vor.u32 %v4304_v57, %v3268_v56  ;;  %v4324_v56 = vld [vmem:[#allocation8 + $0x354] sm:$0xf] }
  0xf3   :  { %1984 = vmatmul.bf16.vlgmr.msra.gmra.mxu2 %v4815_v4  ;;  %v4376_v60 = vld [vmem:[#allocation8 + $0x4ec] sm:$0xf0]  ;;  %v3366_v57 = vld [vmem:[#allocation8 + $0x370] sm:$0xf0] }
  0xf4   :  { %2028 = vmatpush.bf16.msrb.mxu2 %v3685_v17  ;;  %1997 = vmatmul.bf16.vlgmr.msra.gmra.mxu3 %v4817_v10  ;;  %v3812_v62 = vld [vmem:[#allocation8 + $0x6d0] sm:$0xf]  ;;  %v3557_v3 = vor.u32 %v4376_v60, %v3556_v59  ;;  %v4396_v59 = vld [vmem:[#allocation8 + $0x594] sm:$0xf] }
  0xf5   :  { %2041 = vmatpush.bf16.msrb.mxu3 %v3941_v20  ;;  %2004 = vmatpush.bf16.msrb.mxu0 %v3109_v23  ;;  %v4440_v63 = vld [vmem:[#allocation8 + $0x6ec] sm:$0xf0]  ;;  %v4276_v20 = vld [vmem:[#allocation8 + $0x1d4] sm:$0xf] }
  0xf6   :  { %2017 = vmatpush.bf16.msrb.mxu1 %v3365_v26  ;;  %v2980_v1 = vld [vmem:[#allocation8 + $0x50] sm:$0xf]  ;;  %v3813_v7 = vor.u32 %v4440_v63, %v3812_v62  ;;  %v3177_v31 = vor.u32 %v4276_v20, %v3174_v21  ;;  %v3654_v60 = vld [vmem:[#allocation8 + $0x5b0] sm:$0xf0] }
  0xf7   :  { %v4232_v2 = vld [vmem:[#allocation8 + $0x6c] sm:$0xf0]  ;;  %v4460_v62 = vld [vmem:[#allocation8 + $0x794] sm:$0xf] }
  0xf8   :  { %2029 = vmatpush.bf16.msrb.mxu2 %v3653_v29  ;;  %v3236_v5 = vld [vmem:[#allocation8 + $0x250] sm:$0xf]  ;;  %v2981_v11 = vor.u32 %v4232_v2, %v2980_v1  ;;  %v3910_v63 = vld [vmem:[#allocation8 + $0x7b0] sm:$0xf0] }
  0xf9   :  { %2042 = vmatpush.bf16.msrb.mxu3 %v3909_v32  ;;  %2005 = vmatpush.bf16.msrb.mxu0 %v3077_v35  ;;  %v4296_v6 = vld [vmem:[#allocation8 + $0x26c] sm:$0xf0]  ;;  %v4268_v32 = vld [vmem:[#allocation8 + $0x194] sm:$0xf] }
  0xfa   :  { %2018 = vmatpush.bf16.msrb.mxu1 %v3333_v38  ;;  %v3524_v8 = vld [vmem:[#allocation8 + $0x490] sm:$0xf]  ;;  %v3237_v15 = vor.u32 %v4296_v6, %v3236_v5  ;;  %v3142_v35 = vld [vmem:[#allocation8 + $0x1b0] sm:$0xf0] }
  0xfb   :  { %v4368_v9 = vld [vmem:[#allocation8 + $0x4ac] sm:$0xf0]  ;;  %v3145_v47 = vor.u32 %v4268_v32, %v3142_v35  ;;  %v4252_v1 = vld [vmem:[#allocation8 + $0x114] sm:$0xf] }
  0xfc   :  { %2030 = vmatpush.bf16.msrb.mxu2 %v3621_v42  ;;  %v3780_v12 = vld [vmem:[#allocation8 + $0x690] sm:$0xf]  ;;  %v3525_v19 = vor.u32 %v4368_v9, %v3524_v8  ;;  %v3078_v2 = vld [vmem:[#allocation8 + $0x130] sm:$0xf0] }
  0xfd   :  { %2043 = vmatpush.bf16.msrb.mxu3 %v3877_v45  ;;  %2006 = vmatpush.bf16.msrb.mxu0 %v3045_v49  ;;  %v4432_v13 = vld [vmem:[#allocation8 + $0x6ac] sm:$0xf0]  ;;  %v3686_v45 = vld [vmem:[#allocation8 + $0x5f0] sm:$0xf0] }
  0xfe   :  { %2019 = vmatpush.bf16.msrb.mxu1 %v3301_v52  ;;  %v2948_v14 = vld [vmem:[#allocation8 + $0x10] sm:$0xf]  ;;  %v3781_v23 = vor.u32 %v4432_v13, %v3780_v12  ;;  %v3942_v49 = vld [vmem:[#allocation8 + $0x7f0] sm:$0xf0] }
  0xff   :  { %v4224_v16 = vld [vmem:[#allocation8 + $0x2c] sm:$0xf0]  ;;  %v4260_v52 = vld [vmem:[#allocation8 + $0x154] sm:$0xf] }
 0x100   :  { %2031 = vmatpush.bf16.msrb.mxu2 %v3589_v55  ;;  %v3204_v17 = vld [vmem:[#allocation8 + $0x210] sm:$0xf]  ;;  %v2949_v27 = vor.u32 %v4224_v16, %v2948_v14  ;;  %v3689_v55 = vor.u32 %v4404_v44, %v3686_v45  ;;  %v4316_v5 = vld [vmem:[#allocation8 + $0x314] sm:$0xf]  ;;  %v3817_v45 = vor.u32 %v4436_v36, %v3814_v37 }
 0x101   :  { %2044 = vmatpush.bf16.msrb.mxu3 %v3845_v58  ;;  %2007 = vmatpush.bf16.msrb.mxu0 %v3013_v61  ;;  %v4288_v18 = vld [vmem:[#allocation8 + $0x22c] sm:$0xf0]  ;;  %v3945_v58 = vor.u32 %v4468_v48, %v3942_v49  ;;  %v3113_v61 = vor.u32 %v4260_v52, %v3110_v53  ;;  %v3334_v6 = vld [vmem:[#allocation8 + $0x330] sm:$0xf0] }
 0x102   :  { %2020 = vmatpush.bf16.msrb.mxu1 %v3269_v0  ;;  %v3492_v25 = vld [vmem:[#allocation8 + $0x450] sm:$0xf]  ;;  %v3205_v30 = vor.u32 %v4288_v18, %v3204_v17  ;;  %v3369_v0 = vor.u32 %v4324_v56, %v3366_v57  ;;  %v4388_v8 = vld [vmem:[#allocation8 + $0x554] sm:$0xf]  ;;  %v3337_v14 = vor.u32 %v4316_v5, %v3334_v6 }
 0x103   :  { %v4360_v26 = vld [vmem:[#allocation8 + $0x46c] sm:$0xf0]  ;;  %v3622_v9 = vld [vmem:[#allocation8 + $0x570] sm:$0xf0] }
 0x104   :  { %2032 = vmatpush.bf16.msrb.mxu2 %v3557_v3  ;;  %v3748_v28 = vld [vmem:[#allocation8 + $0x650] sm:$0xf]  ;;  %v3493_v34 = vor.u32 %v4360_v26, %v3492_v25  ;;  %v3657_v3 = vor.u32 %v4396_v59, %v3654_v60  ;;  %v4452_v12 = vld [vmem:[#allocation8 + $0x754] sm:$0xf]  ;;  %v3625_v17 = vor.u32 %v4388_v8, %v3622_v9  ;;  %v4281_v59 = vld [vmem:[#allocation8 + $0x1f4] sm:$0xf0] }
 0x105   :  { %2045 = vmatpush.bf16.msrb.mxu3 %v3813_v7  ;;  %2008 = vmatpush.bf16.msrb.mxu0 %v2981_v11  ;;  %v4424_v29 = vld [vmem:[#allocation8 + $0x66c] sm:$0xf0]  ;;  %v3913_v7 = vor.u32 %v4460_v62, %v3910_v63  ;;  %v3081_v11 = vor.u32 %v4252_v1, %v3078_v2  ;;  %v3878_v13 = vld [vmem:[#allocation8 + $0x770] sm:$0xf0]  ;;  %v3436_v60 = vld [vmem:[#allocation8 + $0x3d8] sm:$0xf] }
 0x106   :  { %2021 = vmatpush.bf16.msrb.mxu1 %v3237_v15  ;;  %v3749_v38 = vor.u32 %v4424_v29, %v3748_v28  ;;  %v3460_v39 = vld [vmem:[#allocation8 + $0x410] sm:$0xf]  ;;  %v4244_v15 = vld [vmem:[#allocation8 + $0xd4] sm:$0xf]  ;;  %v3881_v20 = vor.u32 %v4452_v12, %v3878_v13  ;;  %v4345_v62 = vld [vmem:[#allocation8 + $0x3f4] sm:$0xf0] }
 0x107   :  { %v4352_v40 = vld [vmem:[#allocation8 + $0x42c] sm:$0xf0]  ;;  %v3046_v16 = vld [vmem:[#allocation8 + $0xf0] sm:$0xf0]  ;;  %v3437_v8 = vor.u32 %v4345_v62, %v3436_v60  ;;  %v3404_v12 = vld [vmem:[#allocation8 + $0x398] sm:$0xf] }
 0x108   :  { %2033 = vmatpush.bf16.msrb.mxu2 %v3525_v19  ;;  %v3716_v42 = vld [vmem:[#allocation8 + $0x610] sm:$0xf]  ;;  %v3461_v51 = vor.u32 %v4352_v40, %v3460_v39  ;;  %v4308_v18 = vld [vmem:[#allocation8 + $0x2d4] sm:$0xf]  ;;  %v4337_v13 = vld [vmem:[#allocation8 + $0x3b4] sm:$0xf0] }
 0x109   :  { %2046 = vmatpush.bf16.msrb.mxu3 %v3781_v23  ;;  %2009 = vmatpush.bf16.msrb.mxu0 %v2949_v27  ;;  %v4416_v43 = vld [vmem:[#allocation8 + $0x62c] sm:$0xf0]  ;;  %v3302_v19 = vld [vmem:[#allocation8 + $0x2f0] sm:$0xf0]  ;;  %v3049_v23 = vor.u32 %v4244_v15, %v3046_v16  ;;  %v3308_v62 = vld [vmem:[#allocation8 + $0x2d8] sm:$0xf] }
 0x10a   :  { %2022 = vmatpush.bf16.msrb.mxu1 %v3205_v30  ;;  %v3717_v54 = vor.u32 %v4416_v43, %v3716_v42  ;;  %v4380_v21 = vld [vmem:[#allocation8 + $0x514] sm:$0xf]  ;;  %v3305_v26 = vor.u32 %v4308_v18, %v3302_v19  ;;  %v3692_v19 = vld [vmem:[#allocation8 + $0x5d8] sm:$0xf] }
 0x10b   :  { %v3846_v25 = vld [vmem:[#allocation8 + $0x730] sm:$0xf0]  ;;  %v3593_v29 = vor.u32 %v4380_v21, %v3590_v22  ;;  %v3948_v22 = vld [vmem:[#allocation8 + $0x7d8] sm:$0xf] }
 0x10c   :  { %2034 = vmatpush.bf16.msrb.mxu2 %v3493_v34  ;;  %2010 = vmatmul.bf16.vlgmr.msrb.gmra.mxu0 %v4809_v41  ;;  %v4236_v27 = vld [vmem:[#allocation8 + $0x94] sm:$0xf]  ;;  %v3849_v32 = vor.u32 %v4444_v24, %v3846_v25  ;;  %v3405_v24 = vor.u32 %v4337_v13, %v3404_v12  ;;  %v3276_v12 = vld [vmem:[#allocation8 + $0x298] sm:$0xf] }
 0x10d   :  { %2054 = vmatpush.bf16.msra.mxu0 %v3177_v31  ;;  %2047 = vmatpush.bf16.msrb.mxu3 %v3749_v38  ;;  %v3014_v28 = vld [vmem:[#allocation8 + $0xb0] sm:$0xf0]  ;;  %v4305_v13 = vld [vmem:[#allocation8 + $0x2b4] sm:$0xf0] }
 0x10e   :  { %2067 = vmatpush.bf16.msra.mxu1 %v3433_v33  ;;  %v4300_v30 = vld [vmem:[#allocation8 + $0x294] sm:$0xf]  ;;  %v3017_v35 = vor.u32 %v4236_v27, %v3014_v28  ;;  %v4265_v27 = vld [vmem:[#allocation8 + $0x174] sm:$0xf0]  ;;  %v4837_v28 = vld [vmem:[#allocation10] sm:$0xff] }
 0x10f   :  { %2023 = vmatmul.bf16.vlgmr.msrb.gmra.mxu1 %v4811_v46  ;;  %v3270_v31 = vld [vmem:[#allocation8 + $0x2b0] sm:$0xf0]  ;;  %v498_v37 = vperm.slane %v4837_v28, 0 }
 0x110   :  { %2035 = vmatpush.bf16.msrb.mxu2 %v3461_v51  ;;  %v4372_v33 = vld [vmem:[#allocation8 + $0x4d4] sm:$0xf]  ;;  %v3273_v38 = vor.u32 %v4300_v30, %v3270_v31  ;;  %v3372_v31 = vld [vmem:[#allocation8 + $0x358] sm:$0xf] }
 0x111   :  { %2055 = vmatpush.bf16.msra.mxu0 %v3145_v47  ;;  %2048 = vmatpush.bf16.msrb.mxu3 %v3717_v54  ;;  %v3558_v34 = vld [vmem:[#allocation8 + $0x4f0] sm:$0xf0] }
 0x112   :  { %2068 = vmatpush.bf16.msra.mxu1 %v3401_v50  ;;  %v4228_v39 = vld [vmem:[#allocation8 + $0x54] sm:$0xf]  ;;  %v3561_v42 = vor.u32 %v4372_v33, %v3558_v34  ;;  %v3660_v34 = vld [vmem:[#allocation8 + $0x598] sm:$0xf] }
 0x113   :  { %2036 = vmatmul.bf16.vlgmr.msrb.gmra.mxu2 %v4815_v4  ;;  %v2982_v40 = vld [vmem:[#allocation8 + $0x70] sm:$0xf0] }
 0x114   :  { %2080 = vmatpush.bf16.msra.mxu2 %v3689_v55  ;;  %2049 = vmatmul.bf16.vlgmr.msrb.gmra.mxu3 %v4817_v10  ;;  %v4292_v43 = vld [vmem:[#allocation8 + $0x254] sm:$0xf]  ;;  %v2985_v49 = vor.u32 %v4228_v39, %v2982_v40  ;;  %v4465_v39 = vld [vmem:[#allocation8 + $0x7b4] sm:$0xf0] }
 0x115   :  { %2093 = vmatpush.bf16.msra.mxu3 %v3945_v58  ;;  %2056 = vmatpush.bf16.msra.mxu0 %v3113_v61  ;;  %v3238_v44 = vld [vmem:[#allocation8 + $0x270] sm:$0xf0]  ;;  %v3180_v58 = vld [vmem:[#allocation8 + $0x1d8] sm:$0xf] }
 0x116   :  { %2069 = vmatpush.bf16.msra.mxu1 %v3369_v0  ;;  %v4364_v47 = vld [vmem:[#allocation8 + $0x494] sm:$0xf]  ;;  %v3241_v53 = vor.u32 %v4292_v43, %v3238_v44  ;;  %v3181_v6 = vor.u32 %v4281_v59, %v3180_v58  ;;  %v4257_v43 = vld [vmem:[#allocation8 + $0x134] sm:$0xf0] }
 0x117   :  { %v3526_v48 = vld [vmem:[#allocation8 + $0x4b0] sm:$0xf0]  ;;  %v3052_v58 = vld [vmem:[#allocation8 + $0xd8] sm:$0xf] }
 0x118   :  { %2081 = vmatpush.bf16.msra.mxu2 %v3657_v3  ;;  %v4428_v50 = vld [vmem:[#allocation8 + $0x694] sm:$0xf]  ;;  %v3529_v57 = vor.u32 %v4364_v47, %v3526_v48  ;;  %v4321_v47 = vld [vmem:[#allocation8 + $0x334] sm:$0xf0] }
 0x119   :  { %2094 = vmatpush.bf16.msra.mxu3 %v3913_v7  ;;  %2057 = vmatpush.bf16.msra.mxu0 %v3081_v11  ;;  %v3782_v51 = vld [vmem:[#allocation8 + $0x6b0] sm:$0xf0]  ;;  %v3148_v7 = vld [vmem:[#allocation8 + $0x198] sm:$0xf] }
 0x11a   :  { %2070 = vmatpush.bf16.msra.mxu1 %v3337_v14  ;;  %v4220_v52 = vld [vmem:[#allocation8 + $0x14] sm:$0xf]  ;;  %v3785_v61 = vor.u32 %v4428_v50, %v3782_v51  ;;  %v4273_v11 = vld [vmem:[#allocation8 + $0x1b4] sm:$0xf0] }
 0x11b   :  { %v2950_v54 = vld [vmem:[#allocation8 + $0x30] sm:$0xf0]  ;;  %v3149_v21 = vor.u32 %v4273_v11, %v3148_v7  ;;  %v3628_v50 = vld [vmem:[#allocation8 + $0x558] sm:$0xf] }
 0x11c   :  { %2082 = vmatpush.bf16.msra.mxu2 %v3625_v17  ;;  %v4284_v55 = vld [vmem:[#allocation8 + $0x214] sm:$0xf]  ;;  %v2953_v1 = vor.u32 %v4220_v52, %v2950_v54  ;;  %v4393_v51 = vld [vmem:[#allocation8 + $0x574] sm:$0xf0] }
 0x11d   :  { %2095 = vmatpush.bf16.msra.mxu3 %v3881_v20  ;;  %2058 = vmatpush.bf16.msra.mxu0 %v3049_v23  ;;  %v3206_v56 = vld [vmem:[#allocation8 + $0x230] sm:$0xf0]  ;;  %v4409_v20 = vld [vmem:[#allocation8 + $0x5f4] sm:$0xf0] }
 0x11e   :  { %2071 = vmatpush.bf16.msra.mxu1 %v3305_v26  ;;  %v4356_v63 = vld [vmem:[#allocation8 + $0x454] sm:$0xf]  ;;  %v3209_v5 = vor.u32 %v4284_v55, %v3206_v56  ;;  %v4473_v23 = vld [vmem:[#allocation8 + $0x7f4] sm:$0xf0]  ;;  %v3693_v30 = vor.u32 %v4409_v20, %v3692_v19 }
 0x11f   :  { %v3494_v0 = vld [vmem:[#allocation8 + $0x470] sm:$0xf0]  ;;  %v3116_v26 = vld [vmem:[#allocation8 + $0x158] sm:$0xf]  ;;  %v3949_v33 = vor.u32 %v4473_v23, %v3948_v22  ;;  %v3277_v22 = vor.u32 %v4305_v13, %v3276_v12 }
 0x120   :  { %2083 = vmatpush.bf16.msra.mxu2 %v3593_v29  ;;  %v4420_v2 = vld [vmem:[#allocation8 + $0x654] sm:$0xf]  ;;  %v3497_v9 = vor.u32 %v4356_v63, %v3494_v0  ;;  %v3117_v36 = vor.u32 %v4265_v27, %v3116_v26  ;;  %v3884_v55 = vld [vmem:[#allocation8 + $0x758] sm:$0xf] }
 0x121   :  { %2096 = vmatpush.bf16.msra.mxu3 %v3849_v32  ;;  %2059 = vmatpush.bf16.msra.mxu0 %v3017_v35  ;;  %v3750_v3 = vld [vmem:[#allocation8 + $0x670] sm:$0xf0]  ;;  %v4329_v32 = vld [vmem:[#allocation8 + $0x374] sm:$0xf0] }
 0x122   :  { %2072 = vmatpush.bf16.msra.mxu1 %v3273_v38  ;;  %v3753_v14 = vor.u32 %v4420_v2, %v3750_v3  ;;  %v4348_v15 = vld [vmem:[#allocation8 + $0x414] sm:$0xf]  ;;  %v4401_v35 = vld [vmem:[#allocation8 + $0x5b4] sm:$0xf0]  ;;  %v3373_v40 = vor.u32 %v4329_v32, %v3372_v31 }
 0x123   :  { %v3462_v16 = vld [vmem:[#allocation8 + $0x430] sm:$0xf0]  ;;  %v3916_v38 = vld [vmem:[#allocation8 + $0x798] sm:$0xf]  ;;  %v3661_v44 = vor.u32 %v4401_v35, %v3660_v34 }
 0x124   :  { %2084 = vmatpush.bf16.msra.mxu2 %v3561_v42  ;;  %v4412_v17 = vld [vmem:[#allocation8 + $0x614] sm:$0xf]  ;;  %v3465_v25 = vor.u32 %v4348_v15, %v3462_v16  ;;  %v3084_v42 = vld [vmem:[#allocation8 + $0x118] sm:$0xf] }
 0x125   :  { %2097 = vmatpush.bf16.msra.mxu3 %v3817_v45  ;;  %2060 = vmatpush.bf16.msra.mxu0 %v2985_v49  ;;  %v3718_v18 = vld [vmem:[#allocation8 + $0x630] sm:$0xf0]  ;;  %v3340_v45 = vld [vmem:[#allocation8 + $0x318] sm:$0xf]  ;;  %v3917_v49 = vor.u32 %v4465_v39, %v3916_v38  ;;  %v3085_v54 = vor.u32 %v4257_v43, %v3084_v42 }
 0x126   :  { %2073 = vmatpush.bf16.msra.mxu1 %v3241_v53  ;;  %v3721_v29 = vor.u32 %v4412_v17, %v3718_v18  ;;  %v4457_v56 = vld [vmem:[#allocation8 + $0x774] sm:$0xf0] }
 0x127   :  { %v4249_v59 = vld [vmem:[#allocation8 + $0xf4] sm:$0xf0]  ;;  %v3885_v0 = vor.u32 %v4457_v56, %v3884_v55 }
 0x128   :  { %2085 = vmatpush.bf16.msra.mxu2 %v3529_v57  ;;  %v1803_v48 = vpop.f32.mrf.mxu0  ;;  %v3341_v57 = vor.u32 %v4321_v47, %v3340_v45  ;;  %v4313_v63 = vld [vmem:[#allocation8 + $0x2f4] sm:$0xf0]  ;;  %v3053_v3 = vor.u32 %v4249_v59, %v3052_v58  ;;  %v3182_v45 = vld [vmem:[#allocation8 + $0x1f8] sm:$0xf0] }
 0x129   :  { %2098 = vmatpush.bf16.msra.mxu3 %v3785_v61  ;;  %2061 = vmatpush.bf16.msra.mxu0 %v2953_v1  ;;  %v1804_v52 = vadd.f32 %v1803_v48, %v498_v37  ;;  %v1816_v53 = vpop.f32.mrf.mxu1  ;;  %v3629_v61 = vor.u32 %v4393_v51, %v3628_v50  ;;  %v3596_v1 = vld [vmem:[#allocation8 + $0x518] sm:$0xf]  ;;  %v3309_v7 = vor.u32 %v4313_v63, %v3308_v62  ;;  %v4341_v47 = vld [vmem:[#allocation8 + $0x3dc] sm:$0xf] }
 0x12a   :  { %2074 = vmatpush.bf16.msra.mxu1 %v3209_v5  ;;  %v4385_v2 = vld [vmem:[#allocation8 + $0x534] sm:$0xf0]  ;;  %v3438_v50 = vld [vmem:[#allocation8 + $0x3f8] sm:$0xf0] }
 0x12b   :  { %v4844_v60 = vadd.f32 %v1816_v53, %v1804_v52  ;;  %v3852_v5 = vld [vmem:[#allocation8 + $0x718] sm:$0xf]  ;;  %v3597_v11 = vor.u32 %v4385_v2, %v3596_v1  ;;  %v4269_v59 = vld [vmem:[#allocation8 + $0x19c] sm:$0xf] }
 0x12c   :  { %2086 = vmatpush.bf16.msra.mxu2 %v3497_v9  ;;  %2062 = vmatmul.bf16.vlgmr.msra.gmra.mxu0 %v4809_v41  ;;  %v4241_v9 = vld [vmem:[#allocation8 + $0xb4] sm:$0xf0]  ;;  %v3150_v63 = vld [vmem:[#allocation8 + $0x1b8] sm:$0xf0] }
 0x12d   :  { %2106 = vmatpush.bf16.msrb.mxu0 %v3181_v6  ;;  %2099 = vmatpush.bf16.msra.mxu3 %v3753_v14  ;;  %v4449_v6 = vld [vmem:[#allocation8 + $0x734] sm:$0xf0]  ;;  %v3406_v1 = vld [vmem:[#allocation8 + $0x3b8] sm:$0xf0]  ;;  %v3153_v13 = vor.u32 %v4269_v59, %v3150_v63 }
 0x12e   :  { %2119 = vmatpush.bf16.msrb.mxu1 %v3437_v8  ;;  %v3020_v8 = vld [vmem:[#allocation8 + $0x98] sm:$0xf]  ;;  %v3853_v15 = vor.u32 %v4449_v6, %v3852_v5  ;;  %v3598_v63 = vld [vmem:[#allocation8 + $0x538] sm:$0xf0] }
 0x12f   :  { %2075 = vmatmul.bf16.vlgmr.msra.gmra.mxu1 %v4811_v46  ;;  %v3564_v16 = vld [vmem:[#allocation8 + $0x4d8] sm:$0xf]  ;;  %v3021_v19 = vor.u32 %v4241_v9, %v3020_v8  ;;  %v4405_v9 = vld [vmem:[#allocation8 + $0x5dc] sm:$0xf] }
 0x130   :  { %2087 = vmatpush.bf16.msra.mxu2 %v3465_v25  ;;  %v1805_v14 = vpop.f32.mrf.mxu0  ;;  %v4377_v17 = vld [vmem:[#allocation8 + $0x4f4] sm:$0xf0] }
 0x131   :  { %2107 = vmatpush.bf16.msrb.mxu0 %v3149_v21  ;;  %2100 = vmatpush.bf16.msra.mxu3 %v3721_v29  ;;  %v1818_v18 = vpop.f32.mrf.mxu1  ;;  %v3820_v20 = vld [vmem:[#allocation8 + $0x6d8] sm:$0xf]  ;;  %v3565_v25 = vor.u32 %v4377_v17, %v3564_v16  ;;  %v4469_v14 = vld [vmem:[#allocation8 + $0x7dc] sm:$0xf] }
 0x132   :  { %2120 = vmatpush.bf16.msrb.mxu1 %v3405_v24  ;;  %v4441_v21 = vld [vmem:[#allocation8 + $0x6f4] sm:$0xf0]  ;;  %v4261_v18 = vld [vmem:[#allocation8 + $0x15c] sm:$0xf] }
 0x133   :  { %2088 = vmatmul.bf16.vlgmr.msra.gmra.mxu2 %v4815_v4  ;;  %v2988_v23 = vld [vmem:[#allocation8 + $0x58] sm:$0xf]  ;;  %v3821_v29 = vor.u32 %v4441_v21, %v3820_v20 }
 0x134   :  { %2132 = vmatpush.bf16.msrb.mxu2 %v3693_v30  ;;  %2101 = vmatmul.bf16.vlgmr.msra.gmra.mxu3 %v4817_v10  ;;  %v4233_v24 = vld [vmem:[#allocation8 + $0x74] sm:$0xf0] }
 0x135   :  { %2145 = vmatpush.bf16.msrb.mxu3 %v3949_v33  ;;  %2108 = vmatpush.bf16.msrb.mxu0 %v3117_v36  ;;  %v3244_v26 = vld [vmem:[#allocation8 + $0x258] sm:$0xf]  ;;  %v2989_v33 = vor.u32 %v4233_v24, %v2988_v23  ;;  %v4325_v23 = vld [vmem:[#allocation8 + $0x35c] sm:$0xf] }
 0x136   :  { %2121 = vmatpush.bf16.msrb.mxu1 %v3373_v40  ;;  %v4297_v27 = vld [vmem:[#allocation8 + $0x274] sm:$0xf0]  ;;  %v4846_v32 = vpop.f32.mrf.mxu2  ;;  %v3374_v24 = vld [vmem:[#allocation8 + $0x378] sm:$0xf0] }
 0x137   :  { %v3532_v30 = vld [vmem:[#allocation8 + $0x498] sm:$0xf]  ;;  %v4848_v37 = vpop.f32.mrf.mxu3  ;;  %v3245_v38 = vor.u32 %v4297_v27, %v3244_v26  ;;  %v4397_v27 = vld [vmem:[#allocation8 + $0x59c] sm:$0xf] }
 0x138   :  { %2133 = vmatpush.bf16.msrb.mxu2 %v3661_v44  ;;  %v4369_v31 = vld [vmem:[#allocation8 + $0x4b4] sm:$0xf0]  ;;  %v4277_v44 = vld [vmem:[#allocation8 + $0x1dc] sm:$0xf]  ;;  %v4850_v48 = vpop.f32.mrf.mxu0 }
 0x139   :  { %2146 = vmatpush.bf16.msrb.mxu3 %v3917_v49  ;;  %2109 = vmatpush.bf16.msrb.mxu0 %v3085_v54  ;;  %v3788_v34 = vld [vmem:[#allocation8 + $0x698] sm:$0xf]  ;;  %v3533_v43 = vor.u32 %v4369_v31, %v3532_v30  ;;  %v4852_v53 = vpop.f32.mrf.mxu1  ;;  %v3185_v58 = vor.u32 %v4277_v44, %v3182_v45  ;;  %v4461_v31 = vld [vmem:[#allocation8 + $0x79c] sm:$0xf] }
 0x13a   :  { %2122 = vmatpush.bf16.msrb.mxu1 %v3341_v57  ;;  %v4433_v35 = vld [vmem:[#allocation8 + $0x6b4] sm:$0xf0]  ;;  %v4389_v44 = vld [vmem:[#allocation8 + $0x55c] sm:$0xf] }
 0x13b   :  { %v2956_v36 = vld [vmem:[#allocation8 + $0x18] sm:$0xf]  ;;  %v3789_v49 = vor.u32 %v4433_v35, %v3788_v34  ;;  %v3377_v34 = vor.u32 %v4325_v23, %v3374_v24  ;;  %v4253_v35 = vld [vmem:[#allocation8 + $0x11c] sm:$0xf] }
 0x13c   :  { %2134 = vmatpush.bf16.msrb.mxu2 %v3629_v61  ;;  %v4225_v39 = vld [vmem:[#allocation8 + $0x34] sm:$0xf0]  ;;  %v3441_v61 = vor.u32 %v4341_v47, %v3438_v50  ;;  %v3630_v45 = vld [vmem:[#allocation8 + $0x578] sm:$0xf0] }
 0x13d   :  { %2147 = vmatpush.bf16.msrb.mxu3 %v3885_v0  ;;  %2110 = vmatpush.bf16.msrb.mxu0 %v3053_v3  ;;  %v3212_v40 = vld [vmem:[#allocation8 + $0x218] sm:$0xf]  ;;  %v2957_v54 = vor.u32 %v4225_v39, %v2956_v36  ;;  %v4333_v0 = vld [vmem:[#allocation8 + $0x39c] sm:$0xf] }
 0x13e   :  { %2123 = vmatpush.bf16.msrb.mxu1 %v3309_v7  ;;  %v4289_v42 = vld [vmem:[#allocation8 + $0x234] sm:$0xf0]  ;;  %v1831_v7 = vpop.f32.mrf.mxu2  ;;  %v3409_v16 = vor.u32 %v4333_v0, %v3406_v1  ;;  %v3086_v36 = vld [vmem:[#allocation8 + $0x138] sm:$0xf0] }
 0x13f   :  { %v3500_v51 = vld [vmem:[#allocation8 + $0x458] sm:$0xf]  ;;  %v3213_v57 = vor.u32 %v4289_v42, %v3212_v40  ;;  %v1844_v12 = vpop.f32.mrf.mxu3  ;;  %v4317_v39 = vld [vmem:[#allocation8 + $0x31c] sm:$0xf] }
 0x140   :  { %2135 = vmatpush.bf16.msrb.mxu2 %v3597_v11  ;;  %v4361_v52 = vld [vmem:[#allocation8 + $0x474] sm:$0xf0]  ;;  %v3694_v11 = vld [vmem:[#allocation8 + $0x5f8] sm:$0xf0]  ;;  %v1857_v20 = vpop.f32.mrf.mxu0 }
 0x141   :  { %2148 = vmatpush.bf16.msrb.mxu3 %v3853_v15  ;;  %2111 = vmatpush.bf16.msrb.mxu0 %v3021_v19  ;;  %v3756_v55 = vld [vmem:[#allocation8 + $0x658] sm:$0xf]  ;;  %v3501_v62 = vor.u32 %v4361_v52, %v3500_v51  ;;  %v3950_v15 = vld [vmem:[#allocation8 + $0x7f8] sm:$0xf0] }
 0x142   :  { %2124 = vmatpush.bf16.msrb.mxu1 %v3277_v22  ;;  %v4425_v56 = vld [vmem:[#allocation8 + $0x674] sm:$0xf0]  ;;  %v3118_v19 = vld [vmem:[#allocation8 + $0x178] sm:$0xf0]  ;;  %v3697_v22 = vor.u32 %v4405_v9, %v3694_v11  ;;  %v3953_v26 = vor.u32 %v4469_v14, %v3950_v15 }
 0x143   :  { %v3757_v2 = vor.u32 %v4425_v56, %v3756_v55  ;;  %v3468_v3 = vld [vmem:[#allocation8 + $0x418] sm:$0xf]  ;;  %v3121_v30 = vor.u32 %v4261_v18, %v3118_v19  ;;  %v3342_v40 = vld [vmem:[#allocation8 + $0x338] sm:$0xf0]  ;;  %v3633_v56 = vor.u32 %v4389_v44, %v3630_v45 }
 0x144   :  { %2136 = vmatpush.bf16.msrb.mxu2 %v3565_v25  ;;  %v4353_v5 = vld [vmem:[#allocation8 + $0x434] sm:$0xf0]  ;;  %v1870_v25 = vpop.f32.mrf.mxu1  ;;  %v4453_v50 = vld [vmem:[#allocation8 + $0x75c] sm:$0xf]  ;;  %v3345_v52 = vor.u32 %v4317_v39, %v3342_v40 }
 0x145   :  { %2149 = vmatpush.bf16.msrb.mxu3 %v3821_v29  ;;  %2112 = vmatpush.bf16.msrb.mxu0 %v2989_v33  ;;  %v3724_v6 = vld [vmem:[#allocation8 + $0x618] sm:$0xf]  ;;  %v3469_v17 = vor.u32 %v4353_v5, %v3468_v3  ;;  %v3662_v29 = vld [vmem:[#allocation8 + $0x5b8] sm:$0xf0] }
 0x146   :  { %2125 = vmatpush.bf16.msrb.mxu1 %v3245_v38  ;;  %v4417_v8 = vld [vmem:[#allocation8 + $0x634] sm:$0xf0]  ;;  %v3918_v33 = vld [vmem:[#allocation8 + $0x7b8] sm:$0xf0]  ;;  %v3665_v38 = vor.u32 %v4397_v27, %v3662_v29  ;;  %v4856_v42 = vpop.f32.mrf.mxu2 }
 0x147   :  { %v3725_v21 = vor.u32 %v4417_v8, %v3724_v6  ;;  %v4858_v47 = vpop.f32.mrf.mxu3  ;;  %v3886_v51 = vld [vmem:[#allocation8 + $0x778] sm:$0xf0] }
 0x148   :  { %2137 = vmatpush.bf16.msrb.mxu2 %v3533_v43  ;;  %v3921_v43 = vor.u32 %v4461_v31, %v3918_v33  ;;  %v3054_v55 = vld [vmem:[#allocation8 + $0xf8] sm:$0xf0] }
 0x149   :  { %2150 = vmatpush.bf16.msrb.mxu3 %v3789_v49  ;;  %2113 = vmatpush.bf16.msrb.mxu0 %v2957_v54  ;;  %v3089_v49 = vor.u32 %v4253_v35, %v3086_v36  ;;  %v4245_v54 = vld [vmem:[#allocation8 + $0xdc] sm:$0xf]  ;;  %v4862_v59 = vpop.f32.mrf.mxu0 }
 0x14a   :  { %2126 = vmatpush.bf16.msrb.mxu1 %v3213_v57  ;;  %v4309_v57 = vld [vmem:[#allocation8 + $0x2dc] sm:$0xf]  ;;  %v3057_v1 = vor.u32 %v4245_v54, %v3054_v55 }
 0x14b   :  { %v3854_v3 = vld [vmem:[#allocation8 + $0x738] sm:$0xf0] }
 0x14c   :  { %2138 = vmatpush.bf16.msrb.mxu2 %v3501_v62  ;;  %2114 = vmatmul.bf16.vlgmr.msrb.gmra.mxu0 %v4809_v41  ;;  %v4381_v62 = vld [vmem:[#allocation8 + $0x51c] sm:$0xf]  ;;  %v4864_v0 = vpop.f32.mrf.mxu1 }
 0x14d   :  { %2158 = vmatpush.bf16.msra.mxu0 %v3185_v58  ;;  %2151 = vmatpush.bf16.msrb.mxu3 %v3757_v2  ;;  %v3310_v58 = vld [vmem:[#allocation8 + $0x2f8] sm:$0xf0]  ;;  %v3601_v8 = vor.u32 %v4381_v62, %v3598_v63 }
 0x14e   :  { %2171 = vmatpush.bf16.msra.mxu1 %v3441_v61  ;;  %v3889_v61 = vor.u32 %v4453_v50, %v3886_v51  ;;  %v4445_v2 = vld [vmem:[#allocation8 + $0x71c] sm:$0xf]  ;;  %v3313_v5 = vor.u32 %v4309_v57, %v3310_v58  ;;  %v1883_v12 = vpop.f32.mrf.mxu2  ;;  %v4481_v58 = vld [vmem:[#allocation11 + $0x38] sm:$0xff] }
 0x14f   :  { %2127 = vmatmul.bf16.vlgmr.msrb.gmra.mxu1 %v4811_v46  ;;  %v4237_v6 = vld [vmem:[#allocation8 + $0x9c] sm:$0xf] }
 0x150   :  { %2139 = vmatpush.bf16.msrb.mxu2 %v3469_v17  ;;  %v3022_v7 = vld [vmem:[#allocation8 + $0xb8] sm:$0xf0] }
 0x151   :  { %2159 = vmatpush.bf16.msra.mxu0 %v3153_v13  ;;  %2152 = vmatpush.bf16.msrb.mxu3 %v3725_v21  ;;  %v4301_v9 = vld [vmem:[#allocation8 + $0x29c] sm:$0xf]  ;;  %v3857_v13 = vor.u32 %v4445_v2, %v3854_v3  ;;  %v3025_v17 = vor.u32 %v4237_v6, %v3022_v7 }
 0x152   :  { %2172 = vmatpush.bf16.msra.mxu1 %v3409_v16  ;;  %v3278_v11 = vld [vmem:[#allocation8 + $0x2b8] sm:$0xf0]  ;;  %v1896_v16 = vpop.f32.mrf.mxu3 }
 0x153   :  { %2140 = vmatmul.bf16.vlgmr.msrb.gmra.mxu2 %v4815_v4  ;;  %v4373_v14 = vld [vmem:[#allocation8 + $0x4dc] sm:$0xf]  ;;  %v3281_v20 = vor.u32 %v4301_v9, %v3278_v11  ;;  %v4497_v11 = vld [vmem:[#allocation11 + $0xb8] sm:$0xff]  ;;  %v4487_v16 = vld [vmem:[#allocation11 + $0x68] sm:$0xff] }
 0x154   :  { %2184 = vmatpush.bf16.msra.mxu2 %v3697_v22  ;;  %2153 = vmatmul.bf16.vlgmr.msrb.gmra.mxu3 %v4817_v10  ;;  %v3566_v15 = vld [vmem:[#allocation8 + $0x4f8] sm:$0xf0]  ;;  %v1922_v31 = vpop.f32.mrf.mxu1 }
 0x155   :  { %2197 = vmatpush.bf16.msra.mxu3 %v3953_v26  ;;  %2160 = vmatpush.bf16.msra.mxu0 %v3121_v30  ;;  %v4437_v18 = vld [vmem:[#allocation8 + $0x6dc] sm:$0xf]  ;;  %v3569_v23 = vor.u32 %v4373_v14, %v3566_v15  ;;  %v1909_v26 = vpop.f32.mrf.mxu0  ;;  %v4505_v14 = vld [vmem:[#allocation11 + $0xf8] sm:$0xff]  ;;  %v4479_v15 = vld [vmem:[#allocation11 + $0x28] sm:$0xff] }
 0x156   :  { %2173 = vmatpush.bf16.msra.mxu1 %v3377_v34  ;;  %v3822_v19 = vld [vmem:[#allocation8 + $0x6f8] sm:$0xf0]  ;;  %v4866_v51 = vpop.f32.mrf.mxu2  ;;  %v500_v26 = vperm.slane %v4837_v28, 2 }
 0x157   :  { %v4229_v21 = vld [vmem:[#allocation8 + $0x5c] sm:$0xf]  ;;  %v3825_v27 = vor.u32 %v4437_v18, %v3822_v19  ;;  %v499_v19 = vperm.slane %v4837_v28, 1 }
 0x158   :  { %2185 = vmatpush.bf16.msra.mxu2 %v3665_v38  ;;  %v2990_v22 = vld [vmem:[#allocation8 + $0x78] sm:$0xf0] }
 0x159   :  { %2198 = vmatpush.bf16.msra.mxu3 %v3921_v43  ;;  %2161 = vmatpush.bf16.msra.mxu0 %v3089_v49  ;;  %v4293_v24 = vld [vmem:[#allocation8 + $0x25c] sm:$0xf]  ;;  %v2993_v33 = vor.u32 %v4229_v21, %v2990_v22  ;;  %v4503_v22 = vld [vmem:[#allocation11 + $0xe8] sm:$0xff] }
 0x15a   :  { %2174 = vmatpush.bf16.msra.mxu1 %v3345_v52  ;;  %v3246_v25 = vld [vmem:[#allocation8 + $0x278] sm:$0xf0]  ;;  %v4868_v52 = vpop.f32.mrf.mxu3 }
 0x15b   :  { %v4365_v29 = vld [vmem:[#allocation8 + $0x49c] sm:$0xf]  ;;  %v3249_v36 = vor.u32 %v4293_v24, %v3246_v25  ;;  %v4477_v25 = vld [vmem:[#allocation11 + $0x18] sm:$0xff] }
 0x15c   :  { %2186 = vmatpush.bf16.msra.mxu2 %v3633_v56  ;;  %v3534_v30 = vld [vmem:[#allocation8 + $0x4b8] sm:$0xf0] }
 0x15d   :  { %2199 = vmatpush.bf16.msra.mxu3 %v3889_v61  ;;  %2162 = vmatpush.bf16.msra.mxu0 %v3057_v1  ;;  %v4429_v34 = vld [vmem:[#allocation8 + $0x69c] sm:$0xf]  ;;  %v3537_v40 = vor.u32 %v4365_v29, %v3534_v30  ;;  %v4489_v61 = vld [vmem:[#allocation11 + $0x78] sm:$0xff]  ;;  %v4502_v29 = vld [vmem:[#allocation11 + $0xe0] sm:$0xff] }
 0x15e   :  { %2175 = vmatpush.bf16.msra.mxu1 %v3313_v5  ;;  %v3790_v35 = vld [vmem:[#allocation8 + $0x6b8] sm:$0xf0]  ;;  %v1935_v12 = vpop.f32.mrf.mxu2 }
 0x15f   :  { %v4221_v38 = vld [vmem:[#allocation8 + $0x1c] sm:$0xf]  ;;  %v3793_v45 = vor.u32 %v4429_v34, %v3790_v35 }
 0x160   :  { %2187 = vmatpush.bf16.msra.mxu2 %v3601_v8  ;;  %v2958_v39 = vld [vmem:[#allocation8 + $0x38] sm:$0xf0] }
 0x161   :  { %2200 = vmatpush.bf16.msra.mxu3 %v3857_v13  ;;  %2163 = vmatpush.bf16.msra.mxu0 %v3025_v17  ;;  %v4285_v43 = vld [vmem:[#allocation8 + $0x21c] sm:$0xf]  ;;  %v2961_v54 = vor.u32 %v4221_v38, %v2958_v39  ;;  %v4493_v38 = vld [vmem:[#allocation11 + $0x98] sm:$0xff] }
 0x162   :  { %2176 = vmatpush.bf16.msra.mxu1 %v3281_v20  ;;  %v3214_v44 = vld [vmem:[#allocation8 + $0x238] sm:$0xf0]  ;;  %v1948_v13 = vpop.f32.mrf.mxu3  ;;  %v4495_v20 = vld [vmem:[#allocation11 + $0xa8] sm:$0xff] }
 0x163   :  { %v4357_v49 = vld [vmem:[#allocation8 + $0x45c] sm:$0xf]  ;;  %v3217_v57 = vor.u32 %v4285_v43, %v3214_v44  ;;  %v4511_v13 = vld [vmem:[#allocation11 + $0x128] sm:$0xff] }
 0x164   :  { %2188 = vmatpush.bf16.msra.mxu2 %v3569_v23  ;;  %v3502_v50 = vld [vmem:[#allocation8 + $0x478] sm:$0xf0]  ;;  %v1856_v23 = vadd.f32 %v4850_v48, %v499_v19  ;;  %v1830_v48 = vadd.f32 %v4846_v32, %v4844_v60  ;;  %v4483_v60 = vld [vmem:[#allocation11 + $0x48] sm:$0xff] }
 0x165   :  { %2201 = vmatpush.bf16.msra.mxu3 %v3825_v27  ;;  %2164 = vmatpush.bf16.msra.mxu0 %v2993_v33  ;;  %v4421_v55 = vld [vmem:[#allocation8 + $0x65c] sm:$0xf]  ;;  %v3505_v62 = vor.u32 %v4357_v49, %v3502_v50  ;;  %v501_v27 = vperm.slane %v4837_v28, 3  ;;  %v1908_v33 = vadd.f32 %v4862_v59, %v500_v26 }
 0x166   :  { %v3758_v56 = vld [vmem:[#allocation8 + $0x678] sm:$0xf0]  ;;  %2177 = vmatpush.bf16.msra.mxu1 %v3249_v36  ;;  %v1869_v30 = vadd.f32 %v4852_v53, %v1856_v23  ;;  %v4475_v53 = vld [vmem:[#allocation11 + $0x8] sm:$0xff]  ;;  %v1843_v44 = vadd.f32 %v4848_v37, %v1830_v48  ;;  %v4482_v37 = vld [vmem:[#allocation11 + $0x40] sm:$0xff] }
 0x167   :  { %v3761_v63 = vor.u32 %v4421_v55, %v3758_v56  ;;  %v4349_v1 = vld [vmem:[#allocation8 + $0x41c] sm:$0xf]  ;;  %v4506_v48 = vld [vmem:[#allocation11 + $0x100] sm:$0xff] }
 0x168   :  { %2189 = vmatpush.bf16.msra.mxu2 %v3537_v40  ;;  %v3470_v2 = vld [vmem:[#allocation8 + $0x438] sm:$0xf0]  ;;  %v1882_v35 = vadd.f32 %v4856_v42, %v1869_v30  ;;  %v4501_v40 = vld [vmem:[#allocation11 + $0xd8] sm:$0xff] }
 0x169   :  { %2202 = vmatpush.bf16.msra.mxu3 %v3793_v45  ;;  %2165 = vmatpush.bf16.msra.mxu0 %v2961_v54  ;;  %v4413_v3 = vld [vmem:[#allocation8 + $0x61c] sm:$0xf]  ;;  %v3473_v8 = vor.u32 %v4349_v1, %v3470_v2  ;;  %v1959_v21 = vpop.f32.mrf.mxu0  ;;  %v1921_v45 = vadd.f32 %v4864_v0, %v1908_v33  ;;  %v4513_v0 = vld [vmem:[#allocation11 + $0x138] sm:$0xff]  ;;  %v4499_v1 = vld [vmem:[#allocation11 + $0xc8] sm:$0xff] }
 0x16a   :  { %v3726_v5 = vld [vmem:[#allocation8 + $0x638] sm:$0xf0]  ;;  %2178 = vmatpush.bf16.msra.mxu1 %v3217_v57  ;;  %v1960_v36 = vadd.f32 %v1959_v21, %v501_v27  ;;  %v1895_v32 = vadd.f32 %v4858_v47, %v1882_v35  ;;  %v4474_v57 = vld [vmem:[#allocation11] sm:$0xff]  ;;  %v4521_v47 = vld [vmem:[#allocation11 + $0x178] sm:$0xff]  ;;  %v502_v21 = vperm.slane %v4837_v28, 4 }
 0x16b   :  { %v4480_v6 = vld [vmem:[#allocation11 + $0x30] sm:$0xff]  ;;  %v3729_v9 = vor.u32 %v4413_v3, %v3726_v5  ;;  %v1934_v49 = vadd.f32 %v4866_v51, %v1921_v45  ;;  %v4515_v27 = vld [vmem:[#allocation11 + $0x148] sm:$0xff]  ;;  %v4514_v33 = vld [vmem:[#allocation11 + $0x140] sm:$0xff] }
 0x16c   :  { %2190 = vmatpush.bf16.msra.mxu2 %v3505_v62  ;;  %v4488_v7 = vld [vmem:[#allocation11 + $0x70] sm:$0xff]  ;;  %2166 = vmatmul.bf16.vlgmr.msra.gmra.mxu0 %v4809_v41  ;;  %v4478_v41 = vld [vmem:[#allocation11 + $0x20] sm:$0xff]  ;;  %v1972_v24 = vpop.f32.mrf.mxu1  ;;  %v4491_v62 = vld [vmem:[#allocation11 + $0x88] sm:$0xff] }
 0x16d   :  { %2742 = vmatpush.bf16.msrb.mxu0 %v4481_v58  ;;  %2203 = vmatpush.bf16.msra.mxu3 %v3761_v63  ;;  %v4496_v17 = vld [vmem:[#allocation11 + $0xb0] sm:$0xff]  ;;  %v1973_v59 = vadd.f32 %v1972_v24, %v1960_v36  ;;  %v2210_v58 = vmax.f32 %v1843_v44, 0.0  ;;  %v1947_v63 = vadd.f32 %v4868_v52, %v1934_v49  ;;  %v4529_v35 = vld [vmem:[#allocation11 + $0x1b8] sm:$0xff]  ;;  %v4526_v44 = vld [vmem:[#allocation11 + $0x1a0] sm:$0xff] }
 0x16e   :  { %2755 = vmatpush.bf16.msrb.mxu1 %v4489_v61  ;;  %v4504_v18 = vld [vmem:[#allocation11 + $0xf0] sm:$0xff]  ;;  %v2211_v61 = vmax.f32 %v1895_v32, 0.0 }
 0x16f   :  { %2179 = vmatmul.bf16.vlgmr.msra.gmra.mxu1 %v4811_v46  ;;  %v4486_v46 = vld [vmem:[#allocation11 + $0x60] sm:$0xff]  ;;  %v4476_v31 = vld [vmem:[#allocation11 + $0x10] sm:$0xff]  ;;  %v2218_v2 = vpack.c.bf16 %v2210_v58, %v2210_v58 }
 0x170   :  { %2191 = vmatpush.bf16.msra.mxu2 %v3473_v8  ;;  %v4484_v34 = vld [vmem:[#allocation11 + $0x50] sm:$0xff]  ;;  %v2219_v5 = vpack.c.bf16 %v2211_v61, %v2211_v61  ;;  %v2212_v8 = vmax.f32 %v1947_v63, 0.0 }
 0x171   :  { %2743 = vmatpush.bf16.msrb.mxu0 %v4480_v6  ;;  %2204 = vmatpush.bf16.msra.mxu3 %v3729_v9  ;;  %v1961_v39 = vpop.f32.mrf.mxu0  ;;  %v4492_v42 = vld [vmem:[#allocation11 + $0x90] sm:$0xff]  ;;  %v4490_v6 = vld [vmem:[#allocation11 + $0x80] sm:$0xff] }
 0x172   :  { %2756 = vmatpush.bf16.msrb.mxu1 %v4488_v7  ;;  %v4500_v54 = vld [vmem:[#allocation11 + $0xd0] sm:$0xff] }
 0x173   :  { %2192 = vmatmul.bf16.vlgmr.msra.gmra.mxu2 %v4815_v4  ;;  %v4485_v4 = vld [vmem:[#allocation11 + $0x58] sm:$0xff]  ;;  %v4512_v3 = vld [vmem:[#allocation11 + $0x130] sm:$0xff] }
 0x174   :  { %2768 = vmatpush.bf16.msrb.mxu2 %v4497_v11  ;;  %2205 = vmatmul.bf16.vlgmr.msra.gmra.mxu3 %v4817_v10  ;;  %v4494_v10 = vld [vmem:[#allocation11 + $0xa0] sm:$0xff]  ;;  %v1974_v43 = vpop.f32.mrf.mxu1  ;;  %v4520_v7 = vld [vmem:[#allocation11 + $0x170] sm:$0xff] }
 0x175   :  { %2781 = vmatpush.bf16.msrb.mxu3 %v4505_v14  ;;  %2744 = vmatpush.bf16.msrb.mxu0 %v4479_v15  ;;  %v4498_v11 = vld [vmem:[#allocation11 + $0xc0] sm:$0xff]  ;;  %v4519_v14 = vld [vmem:[#allocation11 + $0x168] sm:$0xff]  ;;  %v2220_v15 = vpack.c.bf16 %v2212_v8, %v2212_v8  ;;  %v4516_v23 = vld [vmem:[#allocation11 + $0x150] sm:$0xff] }
 0x176   :  { %2757 = vmatpush.bf16.msrb.mxu1 %v4487_v16  ;;  %v1985_v50 = vpop.f32.mrf.mxu2  ;;  %v4536_v63 = vld [vmem:[#allocation11 + $0x1f0] sm:$0xff] }
 0x177   :  { %v1986_v55 = vadd.f32 %v1985_v50, %v1973_v59  ;;  %v1998_v56 = vpop.f32.mrf.mxu3  ;;  %v503_v59 = vperm.slane %v4837_v28, 5 }
 0x178   :  { %2769 = vmatpush.bf16.msrb.mxu2 %v4496_v17  ;;  %v4510_v17 = vld [vmem:[#allocation11 + $0x120] sm:$0xff] }
 0x179   :  { %2782 = vmatpush.bf16.msrb.mxu3 %v4504_v18  ;;  %2745 = vmatpush.bf16.msrb.mxu0 %v4478_v41  ;;  %v1999_v51 = vadd.f32 %v1998_v56, %v1986_v55  ;;  %v4518_v18 = vld [vmem:[#allocation11 + $0x160] sm:$0xff]  ;;  %v4523_v55 = vld [vmem:[#allocation11 + $0x188] sm:$0xff] }
 0x17a   :  { %2758 = vmatpush.bf16.msrb.mxu1 %v4486_v46  ;;  %v4509_v46 = vld [vmem:[#allocation11 + $0x118] sm:$0xff] }
 0x17b   :  { %v2213_v12 = vmax.f32 %v1999_v51, 0.0 }
 0x17c   :  { %2770 = vmatpush.bf16.msrb.mxu2 %v4495_v20  ;;  %v4517_v20 = vld [vmem:[#allocation11 + $0x158] sm:$0xff] }
 0x17d   :  { %2783 = vmatpush.bf16.msrb.mxu3 %v4503_v22  ;;  %2746 = vmatpush.bf16.msrb.mxu0 %v4477_v25  ;;  %v2221_v16 = vpack.c.bf16 %v2213_v12, %v2213_v12  ;;  %v4508_v22 = vld [vmem:[#allocation11 + $0x110] sm:$0xff] }
 0x17e   :  { %2759 = vmatpush.bf16.msrb.mxu1 %v4485_v4  ;;  %v1987_v9 = vpop.f32.mrf.mxu2  ;;  %v4507_v4 = vld [vmem:[#allocation11 + $0x108] sm:$0xff] }
 0x17f   :  { %v2000_v52 = vpop.f32.mrf.mxu3  ;;  %v504_v9 = vperm.slane %v4837_v28, 6 }
 0x180   :  { %2771 = vmatpush.bf16.msrb.mxu2 %v4494_v10 }
 0x181   :  { %2784 = vmatpush.bf16.msrb.mxu3 %v4502_v29  ;;  %2747 = vmatpush.bf16.msrb.mxu0 %v4476_v31 }
 0x182   :  { %2760 = vmatpush.bf16.msrb.mxu1 %v4484_v34 }
 0x184   :  { %2772 = vmatpush.bf16.msrb.mxu2 %v4493_v38  ;;  %v4528_v38 = vld [vmem:[#allocation11 + $0x1b0] sm:$0xff] }
 0x185   :  { %2785 = vmatpush.bf16.msrb.mxu3 %v4501_v40  ;;  %2748 = vmatpush.bf16.msrb.mxu0 %v4475_v53  ;;  %v4527_v53 = vld [vmem:[#allocation11 + $0x1a8] sm:$0xff] }
 0x186   :  { %2761 = vmatpush.bf16.msrb.mxu1 %v4483_v60  ;;  %v4525_v60 = vld [vmem:[#allocation11 + $0x198] sm:$0xff] }
 0x188   :  { %2773 = vmatpush.bf16.msrb.mxu2 %v4492_v42  ;;  %v4524_v42 = vld [vmem:[#allocation11 + $0x190] sm:$0xff] }
 0x189   :  { %2786 = vmatpush.bf16.msrb.mxu3 %v4500_v54  ;;  %2749 = vmatpush.bf16.msrb.mxu0 %v4474_v57  ;;  %v2011_v19 = vpop.f32.mrf.mxu0 }
 0x18a   :  { %2762 = vmatpush.bf16.msrb.mxu1 %v4482_v37  ;;  %v2012_v24 = vadd.f32 %v2011_v19, %v502_v21  ;;  %v4530_v19 = vld [vmem:[#allocation11 + $0x1c0] sm:$0xff] }
 0x18c   :  { %2774 = vmatpush.bf16.msrb.mxu2 %v4491_v62  ;;  %2750 = vmatmul.bf16.vlgmr.msrb.gmra.mxu0 %v2218_v2  ;;  %v2024_v41 = vpop.f32.mrf.mxu1  ;;  %v4537_v62 = vld [vmem:[#allocation11 + $0x1f8] sm:$0xff] }
 0x18d   :  { %2794 = vmatpush.bf16.msra.mxu0 %v4513_v0  ;;  %2787 = vmatpush.bf16.msrb.mxu3 %v4499_v1  ;;  %v2025_v10 = vadd.f32 %v2024_v41, %v2012_v24  ;;  %v4522_v0 = vld [vmem:[#allocation11 + $0x180] sm:$0xff] }
 0x18e   :  { %2807 = vmatpush.bf16.msra.mxu1 %v4521_v47 }
 0x18f   :  { %2763 = vmatmul.bf16.vlgmr.msrb.gmra.mxu1 %v2219_v5  ;;  %v4534_v5 = vld [vmem:[#allocation11 + $0x1e0] sm:$0xff] }
 0x190   :  { %2775 = vmatpush.bf16.msrb.mxu2 %v4490_v6 }
 0x191   :  { %2795 = vmatpush.bf16.msra.mxu0 %v4512_v3  ;;  %2788 = vmatpush.bf16.msrb.mxu3 %v4498_v11  ;;  %v2013_v25 = vpop.f32.mrf.mxu0  ;;  %v4535_v3 = vld [vmem:[#allocation11 + $0x1e8] sm:$0xff]  ;;  %v4532_v11 = vld [vmem:[#allocation11 + $0x1d0] sm:$0xff] }
 0x192   :  { %2808 = vmatpush.bf16.msra.mxu1 %v4520_v7  ;;  %v4533_v7 = vld [vmem:[#allocation11 + $0x1d8] sm:$0xff]  ;;  %v505_v25 = vperm.slane %v4837_v28, 7 }
 0x193   :  { %2776 = vmatmul.bf16.vlgmr.msrb.gmra.mxu2 %v2220_v15 }
 0x194   :  { %2789 = vmatmul.bf16.vlgmr.msrb.gmra.mxu3 %v2221_v16  ;;  %v2026_v26 = vpop.f32.mrf.mxu1  ;;  %2820 = vmatpush.bf16.msra.mxu2 %v4529_v35 }
 0x195   :  { %2796 = vmatpush.bf16.msra.mxu0 %v4511_v13  ;;  %2833 = vmatpush.bf16.msra.mxu3 %v4537_v62 }
 0x196   :  { %2809 = vmatpush.bf16.msra.mxu1 %v4519_v14  ;;  %v2037_v29 = vpop.f32.mrf.mxu2  ;;  %v4531_v14 = vld [vmem:[#allocation11 + $0x1c8] sm:$0xff] }
 0x197   :  { %v2038_v30 = vadd.f32 %v2037_v29, %v2025_v10  ;;  %v2050_v31 = vpop.f32.mrf.mxu3 }
 0x198   :  { %2821 = vmatpush.bf16.msra.mxu2 %v4528_v38  ;;  %v4551_v38 = vld [vmem:[%s4904_s6] ss:$0 sm:$0xff]  ;;  %s4746_s6 = smov [#allocation13]  }
 0x199   :  { %2797 = vmatpush.bf16.msra.mxu0 %v4510_v17  ;;  %v2051_v34 = vadd.f32 %v2050_v31, %v2038_v30  ;;  %2834 = vmatpush.bf16.msra.mxu3 %v4536_v63  ;;  %s2879_s10 = sshll.u32 %s4746_s6, 4  ;;  %s2880_s10 = int_to_ptr.vmem [resolvable:$true] %s2879_s10 }
 0x19a   :  { %2810 = vmatpush.bf16.msra.mxu1 %v4518_v18 }
 0x19b   :  { %v2214_v36 = vmax.f32 %v2051_v34, 0.0 }
 0x19c   :  { %2822 = vmatpush.bf16.msra.mxu2 %v4527_v53 }
 0x19d   :  { %2798 = vmatpush.bf16.msra.mxu0 %v4509_v46  ;;  %v2222_v39 = vpack.c.bf16 %v2214_v36, %v2214_v36  ;;  %2835 = vmatpush.bf16.msra.mxu3 %v4535_v3 }
 0x19e   :  { %2811 = vmatpush.bf16.msra.mxu1 %v4517_v20  ;;  %v2039_v40 = vpop.f32.mrf.mxu2 }
 0x19f   :  { %v2052_v43 = vpop.f32.mrf.mxu3 }
 0x1a0   :  { %2823 = vmatpush.bf16.msra.mxu2 %v4526_v44 }
 0x1a1   :  { %2799 = vmatpush.bf16.msra.mxu0 %v4508_v22  ;;  %2836 = vmatpush.bf16.msra.mxu3 %v4534_v5 }
 0x1a2   :  { %2812 = vmatpush.bf16.msra.mxu1 %v4516_v23 }
 0x1a4   :  { %2824 = vmatpush.bf16.msra.mxu2 %v4525_v60 }
 0x1a5   :  { %2800 = vmatpush.bf16.msra.mxu0 %v4507_v4  ;;  %2837 = vmatpush.bf16.msra.mxu3 %v4533_v7 }
 0x1a6   :  { %2813 = vmatpush.bf16.msra.mxu1 %v4515_v27 }
 0x1a8   :  { %2825 = vmatpush.bf16.msra.mxu2 %v4524_v42 }
 0x1a9   :  { %2801 = vmatpush.bf16.msra.mxu0 %v4506_v48  ;;  %v2063_v45 = vpop.f32.mrf.mxu0  ;;  %2838 = vmatpush.bf16.msra.mxu3 %v4532_v11 }
 0x1aa   :  { %2814 = vmatpush.bf16.msra.mxu1 %v4514_v33  ;;  %v2064_v49 = vadd.f32 %v2063_v45, %v503_v59 }
 0x1ac   :  { %2802 = vmatmul.bf16.vlgmr.msra.gmra.mxu0 %v2222_v39  ;;  %v2076_v32 = vpop.f32.mrf.mxu1  ;;  %2826 = vmatpush.bf16.msra.mxu2 %v4523_v55 }
 0x1ad   :  { %v2077_v56 = vadd.f32 %v2076_v32, %v2064_v49  ;;  %2839 = vmatpush.bf16.msra.mxu3 %v4531_v14 }
 0x1b0   :  { %2827 = vmatpush.bf16.msra.mxu2 %v4522_v0  ;;  %v2847_v0 = vlaneseq }
 0x1b1   :  { %v2065_v50 = vpop.f32.mrf.mxu0  ;;  %2840 = vmatpush.bf16.msra.mxu3 %v4530_v19 }
 0x1b2   :  { %v2848_v62 = vand.u32 127, %v2847_v0 }
 0x1b4   :  { %v2078_v54 = vpop.f32.mrf.mxu1  ;;  %vm2849_vm1 = vcmp.lt.s32.totalorder %v2848_v62, 16 }
 0x1b6   :  { %v2089_v57 = vpop.f32.mrf.mxu2 }
 0x1b7   :  { %v2090_v58 = vadd.f32 %v2089_v57, %v2077_v56  ;;  %v2102_v37 = vpop.f32.mrf.mxu3 }
 0x1b9   :  { %v2103_v61 = vadd.f32 %v2102_v37, %v2090_v58 }
 0x1bb   :  { %v2215_v47 = vmax.f32 %v2103_v61, 0.0 }
 0x1bd   :  { %v2223_v1 = vpack.c.bf16 %v2215_v47, %v2215_v47 }
 0x1be   :  { %v2091_v51 = vpop.f32.mrf.mxu2 }
 0x1bf   :  { %v2104_v2 = vpop.f32.mrf.mxu3  ;;  %2815 = vmatmul.bf16.vlgmr.msra.gmra.mxu1 %v2223_v1 }
 0x1c9   :  { %v2115_v6 = vpop.f32.mrf.mxu0 }
 0x1ca   :  { %v2116_v12 = vadd.f32 %v2115_v6, %v504_v9 }
 0x1cc   :  { %v2128_v8 = vpop.f32.mrf.mxu1 }
 0x1cd   :  { %v2129_v15 = vadd.f32 %v2128_v8, %v2116_v12 }
 0x1d1   :  { %v2117_v52 = vpop.f32.mrf.mxu0 }
 0x1d4   :  { %v2130_v13 = vpop.f32.mrf.mxu1 }
 0x1d6   :  { %v2141_v16 = vpop.f32.mrf.mxu2 }
 0x1d7   :  { %v2142_v17 = vadd.f32 %v2141_v16, %v2129_v15  ;;  %v2154_v18 = vpop.f32.mrf.mxu3 }
 0x1d9   :  { %v2155_v41 = vadd.f32 %v2154_v18, %v2142_v17 }
 0x1db   :  { %v2216_v46 = vmax.f32 %v2155_v41, 0.0 }
 0x1dd   :  { %v2224_v20 = vpack.c.bf16 %v2216_v46, %v2216_v46 }
 0x1de   :  { %v2143_v21 = vpop.f32.mrf.mxu2 }
 0x1df   :  { %v2156_v22 = vpop.f32.mrf.mxu3  ;;  %2828 = vmatmul.bf16.vlgmr.msra.gmra.mxu2 %v2224_v20 }
 0x1e9   :  { %v2167_v23 = vpop.f32.mrf.mxu0 }
 0x1ea   :  { %v2168_v26 = vadd.f32 %v2167_v23, %v505_v25 }
 0x1ec   :  { %v2180_v24 = vpop.f32.mrf.mxu1 }
 0x1ed   :  { %v2181_v10 = vadd.f32 %v2180_v24, %v2168_v26 }
 0x1f1   :  { %v2169_v4 = vpop.f32.mrf.mxu0 }
 0x1f4   :  { %v2182_v27 = vpop.f32.mrf.mxu1 }
 0x1f6   :  { %v2193_v29 = vpop.f32.mrf.mxu2 }
 0x1f7   :  { %v2194_v30 = vadd.f32 %v2193_v29, %v2181_v10  ;;  %v2206_v31 = vpop.f32.mrf.mxu3 }
 0x1f9   :  { %v2207_v48 = vadd.f32 %v2206_v31, %v2194_v30 }
 0x1fb   :  { %v2217_v33 = vmax.f32 %v2207_v48, 0.0 }
 0x1fd   :  { %v2225_v34 = vpack.c.bf16 %v2217_v33, %v2217_v33 }
 0x1fe   :  { %v2195_v35 = vpop.f32.mrf.mxu2 }
 0x1ff   :  { %v2208_v36 = vpop.f32.mrf.mxu3  ;;  %2841 = vmatmul.bf16.vlgmr.msra.gmra.mxu3 %v2225_v34 }
 0x209   :  { %v2751_v39 = vpop.f32.mrf.mxu0 }
 0x20a   :  { %v2752_v40 = vadd.f32 %v4551_v38, %v2751_v39 }
 0x20c   :  { %v2764_v28 = vpop.f32.mrf.mxu1 }
 0x20d   :  { %v2765_v43 = vadd.f32 %v2764_v28, %v2752_v40 }
 0x211   :  { %v2753_v53 = vpop.f32.mrf.mxu0 }
 0x214   :  { %v2766_v44 = vpop.f32.mrf.mxu1 }
 0x216   :  { %v2777_v45 = vpop.f32.mrf.mxu2 }
 0x217   :  { %v2778_v60 = vadd.f32 %v2777_v45, %v2765_v43  ;;  %v2790_v32 = vpop.f32.mrf.mxu3 }
 0x219   :  { %v2791_v59 = vadd.f32 %v2790_v32, %v2778_v60 }
 0x21e   :  { %v2779_v42 = vpop.f32.mrf.mxu2 }
 0x21f   :  { %v2792_v49 = vpop.f32.mrf.mxu3 }
 0x229   :  { %v2803_v50 = vpop.f32.mrf.mxu0 }
 0x22a   :  { %v2804_v54 = vadd.f32 %v2803_v50, %v2791_v59 }
 0x231   :  { %v2805_v55 = vpop.f32.mrf.mxu0 }
 0x23c   :  { %v2816_v56 = vpop.f32.mrf.mxu1 }
 0x23d   :  { %v2817_v61 = vadd.f32 %v2816_v56, %v2804_v54 }
 0x244   :  { %v2818_v57 = vpop.f32.mrf.mxu1 }
 0x262   :  { %v2829_v58 = vpop.f32.mrf.mxu2 }
 0x263   :  { %v2830_v47 = vadd.f32 %v2829_v58, %v2817_v61 }
 0x26a   :  { %v2831_v37 = vpop.f32.mrf.mxu2 }
 0x282   :  { %v2842_v63 = vpop.f32.mrf.mxu3 }
 0x283   :  { %v2843_v1 = vadd.f32 %v2842_v63, %v2830_v47 }
 0x285   :  { %v2846_v51 = vmax.f32 %v2843_v1, 0.0 }
 0x287   :  { %v2850_v2 = vsel %vm2849_vm1, %v2846_v51, -inf }
 0x288   :  { %2851 = vmax.xlane.f32.xlu0 %v2850_v2 }
 0x28a   :  { %v2844_v3 = vpop.f32.mrf.mxu3 }
 0x2fb   :  { %v2852_v5 = vpop.xlane.xlu0 %2851 }
 0x2fc   :  { %v2853_v6 = vsub.f32 %v2850_v2, %v2852_v5 }
 0x2fe   :  { %v2854_v7 = vmul.f32 1.442695, %v2853_v6 }
 0x300   :  { %4552 = vpow2.f32 %v2854_v7 }
 0x306   :  { %v4553_v8 = vpop.eup %4552 }
 0x307   :  { %2856 = vadd.xlane.f32.xlu0 %v4553_v8 }
 0x37a   :  { %v2857_v9 = vpop.xlane.xlu0 %2856 }
 0x37b   :  { %4554 = vrcp.f32 %v2857_v9  ;;  %v2869_v13 = vand.u32 2147483648, %v2857_v9  ;;  %v2867_v15 = vand.u32 2147483647, %v2857_v9  ;;  %vm2863_vm3 = vweird.f32 %v2857_v9 }
 0x37d   :  { %v2870_v17 = vor.u32 1.1754944e-38, %v2869_v13  ;;  %vm2868_vm5 = vcmp.eq.f32.partialorder %v2867_v15, 8.507059e+37 }
 0x381   :  { %v4555_v11 = vpop.eup %4554 }
 0x382   :  { %v2859_v12 = vmul.f32 %v4555_v11, %v2857_v9  ;;  %vm2864_vm2 = vweird.f32 %v4555_v11 }
 0x383   :  { %vm2865_vm4 = vmor %vm2863_vm3, %vm2864_vm2 }
 0x384   :  { %v2860_v52 = vsub.f32 1.0, %v2859_v12 }
 0x386   :  { %v2861_v14 = vmul.f32 %v4555_v11, %v2860_v52 }
 0x388   :  { %v2862_v16 = vadd.f32 %v4555_v11, %v2861_v14 }
 0x38a   :  { %v2866_v18 = vsel %vm2865_vm4, %v4555_v11, %v2862_v16 }
 0x38b   :  { %v2871_v19 = vsel %vm2868_vm5, %v2870_v17, %v2866_v18 }
 0x38c   :  { %v2872_v41 = vmul.f32 %v4553_v8, %v2871_v19 }
 0x38e   :  { %2873 = vst [vmem:[#allocation13] sm:$0xff] %v2872_v41 }
 0x38f   :  { %2884 = dma.vmem_to_hbm [thread:$0]  %s2880_s10, 128, %s2882_s13, [#allocation4]  }
 0x390   :  { %4732 = dma.done.wait [#allocation4], 128  }
 0x391   :  { %4733 = vsyncadd [#allocation4], 4294967168 }
 0x392   :  { %2889 = vsyncpa [#allocation3], 1 }
 0x393   :  { %2890 = vsyncpa [#allocation6], 1 }
 0x394   :  { %2891 = vsyncpa [#allocation9], 1 }
 0x395   :  { %2892 = vsyncpa [#allocation12], 1 }
 0x396   :  { %2893 = vsyncpa [#allocation4], 1 }

</bundles_post_ra>
